<compile_context>
chip_gen: v7x
topology: tpu7x:2x2x1
jax: 0.10.0
libtpu: 0.0.40
codegen_flags: <defaults>
</compile_context>

<pallas_src>
import functools

import jax
import jax.numpy as jnp
from jax.experimental import pallas as pl
from jax.experimental.pallas import tpu as pltpu

LANES = 128
BN_EPS = 1e-5


def _round_up(x, m):
    return (x + m - 1) // m * m


# ---------------------------------------------------------------------------
# Kernel 1: M-tiled matmul + bias + ReLU (downsampling conv via small im2col)
# ---------------------------------------------------------------------------
def _matmul_bias_relu_kernel(a_ref, w_ref, b_ref, o_ref):
    acc = jnp.dot(a_ref[...], w_ref[...], preferred_element_type=jnp.float32)
    acc = acc + b_ref[...]
    o_ref[...] = jnp.maximum(acc, 0.0).astype(o_ref.dtype)


def matmul_bias_relu(a, w, b_row, *, block_rows=512):
    """relu((M,K)@(K,N) + b). a/w in bf16, N multiple of 128, M tiled/pipelined."""
    M, K = a.shape
    K2, N = w.shape
    assert K == K2
    tm = min(block_rows, _round_up(M, 8))
    m_pad = _round_up(M, tm)
    if m_pad != M:
        a = jnp.pad(a, ((0, m_pad - M), (0, 0)))
    out = pl.pallas_call(
        _matmul_bias_relu_kernel,
        out_shape=jax.ShapeDtypeStruct((m_pad, N), jnp.bfloat16),
        grid=(m_pad // tm,),
        in_specs=[
            pl.BlockSpec((tm, K), lambda i: (i, 0)),
            pl.BlockSpec((K, N), lambda i: (0, 0)),
            pl.BlockSpec((1, N), lambda i: (0, 0)),
        ],
        out_specs=pl.BlockSpec((tm, N), lambda i: (i, 0)),
        compiler_params=pltpu.CompilerParams(
            dimension_semantics=("parallel",)),
    )(a, w, b_row)
    return out[:M]


# ---------------------------------------------------------------------------
# Kernel 2: 3x3 stride-1 conv (in-kernel tap accumulation, no im2col)
#           with fused per-block BatchNorm partial statistics
# ---------------------------------------------------------------------------
def _conv3x3_stats_kernel(x_ref, w_ref, y_ref, psum_ref, pssq_ref):
    # x_ref : (1, H+2, W+2, CP) bf16  spatially zero-padded input block
    # w_ref : (9, CP, CP)       bf16  per-tap weight matrices (t = ky*3 + kx)
    # y_ref : (1, H, W, CP)     bf16  conv output block
    # psum/pssq : (1, 8, CP)    f32   sublane-grouped partial channel sums
    _, H, W, CP = y_ref.shape
    acc = jnp.zeros((H * W, CP), jnp.float32)
    for t in range(9):                       # static unroll: 9 MXU matmuls
        ky, kx = divmod(t, 3)
        patch = x_ref[0, ky:ky + H, kx:kx + W, :].reshape(H * W, CP)
        acc = acc + jnp.dot(patch, w_ref[t],
                            preferred_element_type=jnp.float32)
    y_ref[...] = acc.reshape(1, H, W, CP).astype(y_ref.dtype)
    g = acc.reshape(H * W // 8, 8, CP)
    psum_ref[...] = jnp.sum(g, axis=0)[None]
    pssq_ref[...] = jnp.sum(g * g, axis=0)[None]


def conv3x3_bn_stats(x_act, w_taps):
    """3x3/stride-1/pad-1 conv (bias-free) + fused partial BN statistics."""
    N, H, W, CP = x_act.shape
    assert (H * W) % 8 == 0 and CP % LANES == 0
    x_pad = jnp.pad(x_act, ((0, 0), (1, 1), (1, 1), (0, 0)))
    return pl.pallas_call(
        _conv3x3_stats_kernel,
        out_shape=(
            jax.ShapeDtypeStruct((N, H, W, CP), jnp.bfloat16),
            jax.ShapeDtypeStruct((N, 8, CP), jnp.float32),
            jax.ShapeDtypeStruct((N, 8, CP), jnp.float32),
        ),
        grid=(N,),
        in_specs=[
            pl.BlockSpec((1, H + 2, W + 2, CP), lambda n: (n, 0, 0, 0)),
            pl.BlockSpec((9, CP, CP), lambda n: (0, 0, 0)),
        ],
        out_specs=(
            pl.BlockSpec((1, H, W, CP), lambda n: (n, 0, 0, 0)),
            pl.BlockSpec((1, 8, CP), lambda n: (n, 0, 0)),
            pl.BlockSpec((1, 8, CP), lambda n: (n, 0, 0)),
        ),
        compiler_params=pltpu.CompilerParams(
            dimension_semantics=("parallel",)),
    )(x_pad, w_taps)


# ---------------------------------------------------------------------------
# Kernel 3: fused BatchNorm(batch stats) affine + ReLU (+ residual) epilogue
# ---------------------------------------------------------------------------
def _bn_act_body(y_ref, psum_ref, pssq_ref, gamma_ref, beta_ref, res_ref,
                 o_ref, *, n_rows):
    CP = o_ref.shape[-1]
    inv_n = 1.0 / n_rows
    s = jnp.sum(psum_ref[...], axis=(0, 1), keepdims=True) * inv_n    # (1,1,CP)
    ss = jnp.sum(pssq_ref[...], axis=(0, 1), keepdims=True) * inv_n   # E[x^2]
    var = jnp.maximum(ss - s * s, 0.0)          # biased var, clamped (no NaN)
    scale = gamma_ref[...].reshape(1, 1, CP) * jax.lax.rsqrt(var + BN_EPS)
    shift = beta_ref[...].reshape(1, 1, CP) - s * scale
    z = y_ref[...].astype(jnp.float32) * scale[None] + shift[None]
    if res_ref is not None:
        z = z + res_ref[...].astype(jnp.float32)
    o_ref[...] = jnp.maximum(z, 0.0).astype(o_ref.dtype)


def _bn_act_kernel(y_ref, psum_ref, pssq_ref, gamma_ref, beta_ref, o_ref, *,
                   n_rows):
    _bn_act_body(y_ref, psum_ref, pssq_ref, gamma_ref, beta_ref, None, o_ref,
                 n_rows=n_rows)


def _bn_act_res_kernel(y_ref, psum_ref, pssq_ref, gamma_ref, beta_ref,
                       res_ref, o_ref, *, n_rows):
    _bn_act_body(y_ref, psum_ref, pssq_ref, gamma_ref, beta_ref, res_ref,
                 o_ref, n_rows=n_rows)


def bn_act(y, psum, pssq, gamma, beta, residual=None):
    N, H, W, CP = y.shape
    n_rows = float(N * H * W)
    kernel = _bn_act_res_kernel if residual is not None else _bn_act_kernel
    in_specs = [
        pl.BlockSpec((1, H, W, CP), lambda n: (n, 0, 0, 0)),
        pl.BlockSpec(psum.shape, lambda n: (0, 0, 0)),
        pl.BlockSpec(pssq.shape, lambda n: (0, 0, 0)),
        pl.BlockSpec((1, CP), lambda n: (0, 0)),
        pl.BlockSpec((1, CP), lambda n: (0, 0)),
    ]
    args = [y, psum, pssq, gamma, beta]
    if residual is not None:
        in_specs.append(pl.BlockSpec((1, H, W, CP), lambda n: (n, 0, 0, 0)))
        args.append(residual)
    return pl.pallas_call(
        functools.partial(kernel, n_rows=n_rows),
        out_shape=jax.ShapeDtypeStruct((N, H, W, CP), jnp.bfloat16),
        grid=(N,),
        in_specs=in_specs,
        out_specs=pl.BlockSpec((1, H, W, CP), lambda n: (n, 0, 0, 0)),
        input_output_aliases={0: 0},       # overwrite the conv-output buffer
        compiler_params=pltpu.CompilerParams(
            dimension_semantics=("parallel",)),
    )(*args)


# ---------------------------------------------------------------------------
# Forward pass glue
# ---------------------------------------------------------------------------
def downsample_conv(x_nhwc, w_mat, b_row, *, stride=2, pad=1, k=3):
    """stride-2 3x3 conv + ReLU via small im2col + M-tiled Pallas matmul."""
    N, H, W, Cin = x_nhwc.shape
    cp_out = w_mat.shape[1]
    Ho = (H + 2 * pad - k) // stride + 1
    Wo = (W + 2 * pad - k) // stride + 1
    xp = jnp.pad(x_nhwc, ((0, 0), (pad, pad), (pad, pad), (0, 0)))
    taps = [xp[:, ky:ky + stride * Ho:stride, kx:kx + stride * Wo:stride, :]
            for ky in range(k) for kx in range(k)]
    patches = jnp.concatenate(taps, axis=-1).reshape(N * Ho * Wo, k * k * Cin)
    patches = jnp.pad(
        patches, ((0, 0), (0, w_mat.shape[0] - patches.shape[1])))
    # block_rows=64 keeps a multi-step pipelined grid even at toy sizes;
    # use 512-1024 rows at production sizes.
    out = matmul_bias_relu(patches.astype(jnp.bfloat16), w_mat, b_row,
                           block_rows=64)
    return out.reshape(N, Ho, Wo, cp_out)


def resblock_forward(x_act, rp):
    y1, s1, q1 = conv3x3_bn_stats(x_act, rp["w1"])
    a1 = bn_act(y1, s1, q1, rp["g1"], rp["beta1"])
    y2, s2, q2 = conv3x3_bn_stats(a1, rp["w2"])
    return bn_act(y2, s2, q2, rp["g2"], rp["beta2"], residual=x_act)


def encoder_layer_forward(x_nchw, params, *, cout):
    x = jnp.transpose(x_nchw, (0, 2, 3, 1)).astype(jnp.bfloat16)   # NHWC
    act = downsample_conv(x, params["w_mat"], params["b_row"])
    for rp in params["resblocks"]:
        act = resblock_forward(act, rp)
    out = act[..., :cout].astype(jnp.float32)
    return jnp.transpose(out, (0, 3, 1, 2))                         # NCHW


# ---------------------------------------------------------------------------
# Parameters: raw init (mirrors the module) + packing to the kernel layout
# ---------------------------------------------------------------------------
def init_params(key, n_resblocks, cin, cout, k=3):
    def conv_init(key, ci, co):
        kw_, kb_ = jax.random.split(key)
        w = 0.1 * jax.random.normal(kw_, (k, k, ci, co), jnp.float32)
        b = 0.05 * jax.random.normal(kb_, (co,), jnp.float32)
        return w, b

    keys = jax.random.split(key, 1 + 2 * n_resblocks)
    down_w, down_b = conv_init(keys[0], cin, cout)
    resblocks = []
    for r in range(n_resblocks):
        w1, b1 = conv_init(keys[1 + 2 * r], cout, cout)
        w2, b2 = conv_init(keys[2 + 2 * r], cout, cout)
        resblocks.append(dict(
            w1=w1, b1=b1, g1=jnp.ones((cout,), jnp.float32),
            beta1=jnp.zeros((cout,), jnp.float32),
            w2=w2, b2=b2, g2=jnp.ones((cout,), jnp.float32),
            beta2=jnp.zeros((cout,), jnp.float32),
        ))
    return dict(down_w=down_w, down_b=down_b, resblocks=resblocks)


def pack_params(raw):
    """Pad channels to 128 lanes, cast weights to bf16, build per-tap mats."""
    down_w = raw["down_w"]                       # (k, k, cin, cout)
    k, _, cin, cout = down_w.shape
    cp = _round_up(cout, LANES)
    kk = k * k * cin
    kp = _round_up(kk, LANES)                    # pad contraction dim to 128
    w_mat = (jnp.zeros((kp, cp), jnp.float32)
             .at[:kk, :cout].set(down_w.reshape(kk, cout))
             .astype(jnp.bfloat16))
    b_row = jnp.zeros((1, cp), jnp.float32).at[0, :cout].set(raw["down_b"])

    def taps(w):                                 # (k,k,cout,cout) -> (9,cp,cp)
        w9 = w.reshape(k * k, cout, cout)
        return (jnp.zeros((k * k, cp, cp), jnp.float32)
                .at[:, :cout, :cout].set(w9).astype(jnp.bfloat16))

    def row(v):
        return jnp.zeros((1, cp), jnp.float32).at[0, :cout].set(v)

    resblocks = []
    for rp in raw["resblocks"]:
        # Conv biases b1/b2 are intentionally dropped: BatchNorm with batch
        # statistics subtracts the per-channel mean, cancelling them exactly.
        resblocks.append(dict(
            w1=taps(rp["w1"]), g1=row(rp["g1"]), beta1=row(rp["beta1"]),
            w2=taps(rp["w2"]), g2=row(rp["g2"]), beta2=row(rp["beta2"]),
        ))
    return dict(w_mat=w_mat, b_row=b_row, resblocks=resblocks)


if __name__ == "__main__":
    key = jax.random.PRNGKey(0)
    kx, kp = jax.random.split(key)

    # EncoderLayer(n_resblocks=2, in_channels=4, out_channels=8, stride=2)
    x = jax.random.normal(kx, (2, 4, 16, 16), jnp.float32)
    raw = init_params(kp, n_resblocks=2, cin=4, cout=8)
    packed = pack_params(raw)

    fwd = jax.jit(functools.partial(encoder_layer_forward, cout=8))
    out = jax.block_until_ready(fwd(x, packed))

    assert out.shape == (2, 8, 8, 8), out.shape       # NCHW, stride-2 downsample
    assert bool(jnp.all(jnp.isfinite(out)))
    assert bool(jnp.all(out >= 0.0))                  # final op is ReLU
    print("KERNEL_OK")
</pallas_src>

<mosaic_0001>
module attributes {stable_mosaic.version = 11 : i64} {
  func.func @_matmul_bias_relu_kernel(%arg0: i32, %arg1: memref<64x128xbf16, #tpu.memory_space<vmem>>, %arg2: memref<128x128xbf16, #tpu.memory_space<vmem>>, %arg3: memref<1x128xf32, #tpu.memory_space<vmem>>, %arg4: memref<64x128xbf16, #tpu.memory_space<vmem>>) attributes {dimension_semantics = [#tpu.dimension_semantics<parallel>], iteration_bounds = array<i64: 2>, scalar_prefetch = 0 : i64, scratch_operands = 0 : i64, tpu.core_type = #tpu.core_type<tc>, window_params = [{transform_indices = @transform_0, window_bounds = array<i64: 64, 128>}, {pipeline_mode = #tpu.pipeline_mode<synchronous>, transform_indices = @transform_1, window_bounds = array<i64: 128, 128>}, {pipeline_mode = #tpu.pipeline_mode<synchronous>, transform_indices = @transform_2, window_bounds = array<i64: 1, 128>}, {transform_indices = @transform_3, window_bounds = array<i64: 64, 128>}]} {
    %c0 = arith.constant 0 : index
    %c0_0 = arith.constant 0 : index
    %0 = vector.load %arg1[%c0, %c0_0] : memref<64x128xbf16, #tpu.memory_space<vmem>>, vector<64x128xbf16>
    %c0_1 = arith.constant 0 : index
    %c0_2 = arith.constant 0 : index
    %1 = vector.load %arg2[%c0_1, %c0_2] : memref<128x128xbf16, #tpu.memory_space<vmem>>, vector<128x128xbf16>
    %cst = arith.constant dense<0.000000e+00> : vector<64x128xf32>
    %2 = tpu.matmul %0, %1, %cst {dimension_numbers = #tpu.dot_dimension_numbers<[1], [0], [0], [1], [0, 0, 1, 1], [], []>} : vector<64x128xbf16>, vector<128x128xbf16>, vector<64x128xf32> -> vector<64x128xf32>
    %c0_3 = arith.constant 0 : index
    %c0_4 = arith.constant 0 : index
    %3 = vector.load %arg3[%c0_3, %c0_4] : memref<1x128xf32, #tpu.memory_space<vmem>>, vector<1x128xf32>
    %4 = vector.broadcast %3 : vector<1x128xf32> to vector<64x128xf32>
    %5 = arith.addf %2, %4 : vector<64x128xf32>
    %cst_5 = arith.constant 0.000000e+00 : f32
    %6 = vector.broadcast %cst_5 : f32 to vector<64x128xf32>
    %7 = arith.maximumf %5, %6 : vector<64x128xf32>
    %8 = arith.truncf %7 : vector<64x128xf32> to vector<64x128xbf16>
    %c0_6 = arith.constant 0 : index
    %c0_7 = arith.constant 0 : index
    %9 = vector.load %arg4[%c0_6, %c0_7] : memref<64x128xbf16, #tpu.memory_space<vmem>>, vector<64x128xbf16>
    tpu.vector_store %arg4[%c0_6, %c0_7], %8 {strides = array<i32>} : memref<64x128xbf16, #tpu.memory_space<vmem>>, vector<64x128xbf16>,
    return
  }
  func.func @transform_0(%arg0: i32) -> (i32, i32) {
    %c0_i32 = arith.constant 0 : i32
    %c0_i32_0 = arith.constant 0 : i32
    return %arg0, %c0_i32 : i32, i32
  }
  func.func @transform_1(%arg0: i32) -> (i32, i32) {
    %c0_i32 = arith.constant 0 : i32
    %c0_i32_0 = arith.constant 0 : i32
    %c0_i32_1 = arith.constant 0 : i32
    return %c0_i32, %c0_i32_0 : i32, i32
  }
  func.func @transform_2(%arg0: i32) -> (i32, i32) {
    %c0_i32 = arith.constant 0 : i32
    %c0_i32_0 = arith.constant 0 : i32
    %c0_i32_1 = arith.constant 0 : i32
    return %c0_i32, %c0_i32_0 : i32, i32
  }
  func.func @transform_3(%arg0: i32) -> (i32, i32) {
    %c0_i32 = arith.constant 0 : i32
    %c0_i32_0 = arith.constant 0 : i32
    return %arg0, %c0_i32 : i32, i32
  }
}

module attributes {stable_mosaic.version = 11 : i64} {
  func.func @_conv3x3_stats_kernel(%arg0: i32, %arg1: memref<1x10x10x128xbf16, #tpu.memory_space<vmem>>, %arg2: memref<9x128x128xbf16, #tpu.memory_space<vmem>>, %arg3: memref<1x8x8x128xbf16, #tpu.memory_space<vmem>>, %arg4: memref<1x8x128xf32, #tpu.memory_space<vmem>>, %arg5: memref<1x8x128xf32, #tpu.memory_space<vmem>>) attributes {dimension_semantics = [#tpu.dimension_semantics<parallel>], iteration_bounds = array<i64: 2>, scalar_prefetch = 0 : i64, scratch_operands = 0 : i64, tpu.core_type = #tpu.core_type<tc>, window_params = [{transform_indices = @transform_0, window_bounds = array<i64: 1, 10, 10, 128>}, {pipeline_mode = #tpu.pipeline_mode<synchronous>, transform_indices = @transform_1, window_bounds = array<i64: 9, 128, 128>}, {transform_indices = @transform_2, window_bounds = array<i64: 1, 8, 8, 128>}, {transform_indices = @transform_3, window_bounds = array<i64: 1, 8, 128>}, {transform_indices = @transform_4, window_bounds = array<i64: 1, 8, 128>}]} {
    %cst = arith.constant 0.000000e+00 : f32
    %0 = vector.broadcast %cst : f32 to vector<64x128xf32>
    %c0 = arith.constant 0 : index
    %c0_0 = arith.constant 0 : index
    %c0_1 = arith.constant 0 : index
    %c0_2 = arith.constant 0 : index
    %1 = vector.load %arg1[%c0, %c0_0, %c0_1, %c0_2] : memref<1x10x10x128xbf16, #tpu.memory_space<vmem>>, vector<1x8x8x128xbf16>
    %2 = vector.shape_cast %1 : vector<1x8x8x128xbf16> to vector<8x8x128xbf16>
    %3 = vector.shape_cast %2 : vector<8x8x128xbf16> to vector<64x128xbf16>
    %c0_3 = arith.constant 0 : index
    %c0_4 = arith.constant 0 : index
    %c0_5 = arith.constant 0 : index
    %4 = vector.load %arg2[%c0_3, %c0_4, %c0_5] : memref<9x128x128xbf16, #tpu.memory_space<vmem>>, vector<1x128x128xbf16>
    %5 = vector.shape_cast %4 : vector<1x128x128xbf16> to vector<128x128xbf16>
    %cst_6 = arith.constant dense<0.000000e+00> : vector<64x128xf32>
    %6 = tpu.matmul %3, %5, %cst_6 {dimension_numbers = #tpu.dot_dimension_numbers<[1], [0], [0], [1], [0, 0, 1, 1], [], []>} : vector<64x128xbf16>, vector<128x128xbf16>, vector<64x128xf32> -> vector<64x128xf32>
    %7 = arith.addf %0, %6 : vector<64x128xf32>
    %c0_7 = arith.constant 0 : index
    %c0_8 = arith.constant 0 : index
    %c1 = arith.constant 1 : index
    %c0_9 = arith.constant 0 : index
    %8 = vector.load %arg1[%c0_7, %c0_8, %c1, %c0_9] : memref<1x10x10x128xbf16, #tpu.memory_space<vmem>>, vector<1x8x8x128xbf16>
    %9 = vector.shape_cast %8 : vector<1x8x8x128xbf16> to vector<8x8x128xbf16>
    %10 = vector.shape_cast %9 : vector<8x8x128xbf16> to vector<64x128xbf16>
    %c1_10 = arith.constant 1 : index
    %c0_11 = arith.constant 0 : index
    %c0_12 = arith.constant 0 : index
    %11 = vector.load %arg2[%c1_10, %c0_11, %c0_12] : memref<9x128x128xbf16, #tpu.memory_space<vmem>>, vector<1x128x128xbf16>
    %12 = vector.shape_cast %11 : vector<1x128x128xbf16> to vector<128x128xbf16>
    %cst_13 = arith.constant dense<0.000000e+00> : vector<64x128xf32>
    %13 = tpu.matmul %10, %12, %cst_13 {dimension_numbers = #tpu.dot_dimension_numbers<[1], [0], [0], [1], [0, 0, 1, 1], [], []>} : vector<64x128xbf16>, vector<128x128xbf16>, vector<64x128xf32> -> vector<64x128xf32>
    %14 = arith.addf %7, %13 : vector<64x128xf32>
    %c0_14 = arith.constant 0 : index
    %c0_15 = arith.constant 0 : index
    %c2 = arith.constant 2 : index
    %c0_16 = arith.constant 0 : index
    %15 = vector.load %arg1[%c0_14, %c0_15, %c2, %c0_16] : memref<1x10x10x128xbf16, #tpu.memory_space<vmem>>, vector<1x8x8x128xbf16>
    %16 = vector.shape_cast %15 : vector<1x8x8x128xbf16> to vector<8x8x128xbf16>
    %17 = vector.shape_cast %16 : vector<8x8x128xbf16> to vector<64x128xbf16>
    %c2_17 = arith.constant 2 : index
    %c0_18 = arith.constant 0 : index
    %c0_19 = arith.constant 0 : index
    %18 = vector.load %arg2[%c2_17, %c0_18, %c0_19] : memref<9x128x128xbf16, #tpu.memory_space<vmem>>, vector<1x128x128xbf16>
    %19 = vector.shape_cast %18 : vector<1x128x128xbf16> to vector<128x128xbf16>
    %cst_20 = arith.constant dense<0.000000e+00> : vector<64x128xf32>
    %20 = tpu.matmul %17, %19, %cst_20 {dimension_numbers = #tpu.dot_dimension_numbers<[1], [0], [0], [1], [0, 0, 1, 1], [], []>} : vector<64x128xbf16>, vector<128x128xbf16>, vector<64x128xf32> -> vector<64x128xf32>
    %21 = arith.addf %14, %20 : vector<64x128xf32>
    %c0_21 = arith.constant 0 : index
    %c1_22 = arith.constant 1 : index
    %c0_23 = arith.constant 0 : index
    %c0_24 = arith.constant 0 : index
    %22 = vector.load %arg1[%c0_21, %c1_22, %c0_23, %c0_24] : memref<1x10x10x128xbf16, #tpu.memory_space<vmem>>, vector<1x8x8x128xbf16>
    %23 = vector.shape_cast %22 : vector<1x8x8x128xbf16> to vector<8x8x128xbf16>
    %24 = vector.shape_cast %23 : vector<8x8x128xbf16> to vector<64x128xbf16>
    %c3 = arith.constant 3 : index
    %c0_25 = arith.constant 0 : index
    %c0_26 = arith.constant 0 : index
    %25 = vector.load %arg2[%c3, %c0_25, %c0_26] : memref<9x128x128xbf16, #tpu.memory_space<vmem>>, vector<1x128x128xbf16>
    %26 = vector.shape_cast %25 : vector<1x128x128xbf16> to vector<128x128xbf16>
    %cst_27 = arith.constant dense<0.000000e+00> : vector<64x128xf32>
    %27 = tpu.matmul %24, %26, %cst_27 {dimension_numbers = #tpu.dot_dimension_numbers<[1], [0], [0], [1], [0, 0, 1, 1], [], []>} : vector<64x128xbf16>, vector<128x128xbf16>, vector<64x128xf32> -> vector<64x128xf32>
    %28 = arith.addf %21, %27 : vector<64x128xf32>
    %c0_28 = arith.constant 0 : index
    %c1_29 = arith.constant 1 : index
    %c1_30 = arith.constant 1 : index
    %c0_31 = arith.constant 0 : index
    %29 = vector.load %arg1[%c0_28, %c1_29, %c1_30, %c0_31] : memref<1x10x10x128xbf16, #tpu.memory_space<vmem>>, vector<1x8x8x128xbf16>
    %30 = vector.shape_cast %29 : vector<1x8x8x128xbf16> to vector<8x8x128xbf16>
    %31 = vector.shape_cast %30 : vector<8x8x128xbf16> to vector<64x128xbf16>
    %c4 = arith.constant 4 : index
    %c0_32 = arith.constant 0 : index
    %c0_33 = arith.constant 0 : index
    %32 = vector.load %arg2[%c4, %c0_32, %c0_33] : memref<9x128x128xbf16, #tpu.memory_space<vmem>>, vector<1x128x128xbf16>
    %33 = vector.shape_cast %32 : vector<1x128x128xbf16> to vector<128x128xbf16>
    %cst_34 = arith.constant dense<0.000000e+00> : vector<64x128xf32>
    %34 = tpu.matmul %31, %33, %cst_34 {dimension_numbers = #tpu.dot_dimension_numbers<[1], [0], [0], [1], [0, 0, 1, 1], [], []>} : vector<64x128xbf16>, vector<128x128xbf16>, vector<64x128xf32> -> vector<64x128xf32>
    %35 = arith.addf %28, %34 : vector<64x128xf32>
    %c0_35 = arith.constant 0 : index
    %c1_36 = arith.constant 1 : index
    %c2_37 = arith.constant 2 : index
    %c0_38 = arith.constant 0 : index
    %36 = vector.load %arg1[%c0_35, %c1_36, %c2_37, %c0_38] : memref<1x10x10x128xbf16, #tpu.memory_space<vmem>>, vector<1x8x8x128xbf16>
    %37 = vector.shape_cast %36 : vector<1x8x8x128xbf16> to vector<8x8x128xbf16>
    %38 = vector.shape_cast %37 : vector<8x8x128xbf16> to vector<64x128xbf16>
    %c5 = arith.constant 5 : index
    %c0_39 = arith.constant 0 : index
    %c0_40 = arith.constant 0 : index
    %39 = vector.load %arg2[%c5, %c0_39, %c0_40] : memref<9x128x128xbf16, #tpu.memory_space<vmem>>, vector<1x128x128xbf16>
    %40 = vector.shape_cast %39 : vector<1x128x128xbf16> to vector<128x128xbf16>
    %cst_41 = arith.constant dense<0.000000e+00> : vector<64x128xf32>
    %41 = tpu.matmul %38, %40, %cst_41 {dimension_numbers = #tpu.dot_dimension_numbers<[1], [0], [0], [1], [0, 0, 1, 1], [], []>} : vector<64x128xbf16>, vector<128x128xbf16>, vector<64x128xf32> -> vector<64x128xf32>
    %42 = arith.addf %35, %41 : vector<64x128xf32>
    %c0_42 = arith.constant 0 : index
    %c2_43 = arith.constant 2 : index
    %c0_44 = arith.constant 0 : index
    %c0_45 = arith.constant 0 : index
    %43 = vector.load %arg1[%c0_42, %c2_43, %c0_44, %c0_45] : memref<1x10x10x128xbf16, #tpu.memory_space<vmem>>, vector<1x8x8x128xbf16>
    %44 = vector.shape_cast %43 : vector<1x8x8x128xbf16> to vector<8x8x128xbf16>
    %45 = vector.shape_cast %44 : vector<8x8x128xbf16> to vector<64x128xbf16>
    %c6 = arith.constant 6 : index
    %c0_46 = arith.constant 0 : index
    %c0_47 = arith.constant 0 : index
    %46 = vector.load %arg2[%c6, %c0_46, %c0_47] : memref<9x128x128xbf16, #tpu.memory_space<vmem>>, vector<1x128x128xbf16>
    %47 = vector.shape_cast %46 : vector<1x128x128xbf16> to vector<128x128xbf16>
    %cst_48 = arith.constant dense<0.000000e+00> : vector<64x128xf32>
    %48 = tpu.matmul %45, %47, %cst_48 {dimension_numbers = #tpu.dot_dimension_numbers<[1], [0], [0], [1], [0, 0, 1, 1], [], []>} : vector<64x128xbf16>, vector<128x128xbf16>, vector<64x128xf32> -> vector<64x128xf32>
    %49 = arith.addf %42, %48 : vector<64x128xf32>
    %c0_49 = arith.constant 0 : index
    %c2_50 = arith.constant 2 : index
    %c1_51 = arith.constant 1 : index
    %c0_52 = arith.constant 0 : index
    %50 = vector.load %arg1[%c0_49, %c2_50, %c1_51, %c0_52] : memref<1x10x10x128xbf16, #tpu.memory_space<vmem>>, vector<1x8x8x128xbf16>
    %51 = vector.shape_cast %50 : vector<1x8x8x128xbf16> to vector<8x8x128xbf16>
    %52 = vector.shape_cast %51 : vector<8x8x128xbf16> to vector<64x128xbf16>
    %c7 = arith.constant 7 : index
    %c0_53 = arith.constant 0 : index
    %c0_54 = arith.constant 0 : index
    %53 = vector.load %arg2[%c7, %c0_53, %c0_54] : memref<9x128x128xbf16, #tpu.memory_space<vmem>>, vector<1x128x128xbf16>
    %54 = vector.shape_cast %53 : vector<1x128x128xbf16> to vector<128x128xbf16>
    %cst_55 = arith.constant dense<0.000000e+00> : vector<64x128xf32>
    %55 = tpu.matmul %52, %54, %cst_55 {dimension_numbers = #tpu.dot_dimension_numbers<[1], [0], [0], [1], [0, 0, 1, 1], [], []>} : vector<64x128xbf16>, vector<128x128xbf16>, vector<64x128xf32> -> vector<64x128xf32>
    %56 = arith.addf %49, %55 : vector<64x128xf32>
    %c0_56 = arith.constant 0 : index
    %c2_57 = arith.constant 2 : index
    %c2_58 = arith.constant 2 : index
    %c0_59 = arith.constant 0 : index
    %57 = vector.load %arg1[%c0_56, %c2_57, %c2_58, %c0_59] : memref<1x10x10x128xbf16, #tpu.memory_space<vmem>>, vector<1x8x8x128xbf16>
    %58 = vector.shape_cast %57 : vector<1x8x8x128xbf16> to vector<8x8x128xbf16>
    %59 = vector.shape_cast %58 : vector<8x8x128xbf16> to vector<64x128xbf16>
    %c8 = arith.constant 8 : index
    %c0_60 = arith.constant 0 : index
    %c0_61 = arith.constant 0 : index
    %60 = vector.load %arg2[%c8, %c0_60, %c0_61] : memref<9x128x128xbf16, #tpu.memory_space<vmem>>, vector<1x128x128xbf16>
    %61 = vector.shape_cast %60 : vector<1x128x128xbf16> to vector<128x128xbf16>
    %cst_62 = arith.constant dense<0.000000e+00> : vector<64x128xf32>
    %62 = tpu.matmul %59, %61, %cst_62 {dimension_numbers = #tpu.dot_dimension_numbers<[1], [0], [0], [1], [0, 0, 1, 1], [], []>} : vector<64x128xbf16>, vector<128x128xbf16>, vector<64x128xf32> -> vector<64x128xf32>
    %63 = arith.addf %56, %62 : vector<64x128xf32>
    %64 = vector.shape_cast %63 : vector<64x128xf32> to vector<1x8x8x128xf32>
    %65 = arith.truncf %64 : vector<1x8x8x128xf32> to vector<1x8x8x128xbf16>
    %c0_63 = arith.constant 0 : index
    %c0_64 = arith.constant 0 : index
    %c0_65 = arith.constant 0 : index
    %c0_66 = arith.constant 0 : index
    %66 = vector.load %arg3[%c0_63, %c0_64, %c0_65, %c0_66] : memref<1x8x8x128xbf16, #tpu.memory_space<vmem>>, vector<1x8x8x128xbf16>
    tpu.vector_store %arg3[%c0_63, %c0_64, %c0_65, %c0_66], %65 {strides = array<i32>} : memref<1x8x8x128xbf16, #tpu.memory_space<vmem>>, vector<1x8x8x128xbf16>,
    %67 = vector.shape_cast %63 : vector<64x128xf32> to vector<8x8x128xf32>
    %cst_67 = arith.constant dense<0.000000e+00> : vector<8x128xf32>
    %68 = vector.multi_reduction <add>, %67, %cst_67 [0] : vector<8x8x128xf32> to vector<8x128xf32>
    %69 = vector.shape_cast %68 : vector<8x128xf32> to vector<1x8x128xf32>
    %c0_68 = arith.constant 0 : index
    %c0_69 = arith.constant 0 : index
    %c0_70 = arith.constant 0 : index
    %70 = vector.load %arg4[%c0_68, %c0_69, %c0_70] : memref<1x8x128xf32, #tpu.memory_space<vmem>>, vector<1x8x128xf32>
    tpu.vector_store %arg4[%c0_68, %c0_69, %c0_70], %69 {strides = array<i32>} : memref<1x8x128xf32, #tpu.memory_space<vmem>>, vector<1x8x128xf32>,
    %71 = arith.mulf %67, %67 : vector<8x8x128xf32>
    %cst_71 = arith.constant dense<0.000000e+00> : vector<8x128xf32>
    %72 = vector.multi_reduction <add>, %71, %cst_71 [0] : vector<8x8x128xf32> to vector<8x128xf32>
    %73 = vector.shape_cast %72 : vector<8x128xf32> to vector<1x8x128xf32>
    %c0_72 = arith.constant 0 : index
    %c0_73 = arith.constant 0 : index
    %c0_74 = arith.constant 0 : index
    %74 = vector.load %arg5[%c0_72, %c0_73, %c0_74] : memref<1x8x128xf32, #tpu.memory_space<vmem>>, vector<1x8x128xf32>
    tpu.vector_store %arg5[%c0_72, %c0_73, %c0_74], %73 {strides = array<i32>} : memref<1x8x128xf32, #tpu.memory_space<vmem>>, vector<1x8x128xf32>,
    return
  }
  func.func @transform_0(%arg0: i32) -> (i32, i32, i32, i32) {
    %c0_i32 = arith.constant 0 : i32
    %c0_i32_0 = arith.constant 0 : i32
    %c0_i32_1 = arith.constant 0 : i32
    %c0_i32_2 = arith.constant 0 : i32
    return %arg0, %c0_i32, %c0_i32_0, %c0_i32_1 : i32, i32, i32, i32
  }
  func.func @transform_1(%arg0: i32) -> (i32, i32, i32) {
    %c0_i32 = arith.constant 0 : i32
    %c0_i32_0 = arith.constant 0 : i32
    %c0_i32_1 = arith.constant 0 : i32
    %c0_i32_2 = arith.constant 0 : i32
    return %c0_i32, %c0_i32_0, %c0_i32_1 : i32, i32, i32
  }
  func.func @transform_2(%arg0: i32) -> (i32, i32, i32, i32) {
    %c0_i32 = arith.constant 0 : i32
    %c0_i32_0 = arith.constant 0 : i32
    %c0_i32_1 = arith.constant 0 : i32
    %c0_i32_2 = arith.constant 0 : i32
    return %arg0, %c0_i32, %c0_i32_0, %c0_i32_1 : i32, i32, i32, i32
  }
  func.func @transform_3(%arg0: i32) -> (i32, i32, i32) {
    %c0_i32 = arith.constant 0 : i32
    %c0_i32_0 = arith.constant 0 : i32
    %c0_i32_1 = arith.constant 0 : i32
    return %arg0, %c0_i32, %c0_i32_0 : i32, i32, i32
  }
  func.func @transform_4(%arg0: i32) -> (i32, i32, i32) {
    %c0_i32 = arith.constant 0 : i32
    %c0_i32_0 = arith.constant 0 : i32
    %c0_i32_1 = arith.constant 0 : i32
    return %arg0, %c0_i32, %c0_i32_0 : i32, i32, i32
  }
}

module attributes {stable_mosaic.version = 11 : i64} {
  func.func @_bn_act_kernel(%arg0: i32, %arg1: memref<1x8x8x128xbf16, #tpu.memory_space<vmem>>, %arg2: memref<2x8x128xf32, #tpu.memory_space<vmem>>, %arg3: memref<2x8x128xf32, #tpu.memory_space<vmem>>, %arg4: memref<1x128xf32, #tpu.memory_space<vmem>>, %arg5: memref<1x128xf32, #tpu.memory_space<vmem>>, %arg6: memref<1x8x8x128xbf16, #tpu.memory_space<vmem>>) attributes {dimension_semantics = [#tpu.dimension_semantics<parallel>], iteration_bounds = array<i64: 2>, scalar_prefetch = 0 : i64, scratch_operands = 0 : i64, tpu.core_type = #tpu.core_type<tc>, window_params = [{transform_indices = @transform_0, window_bounds = array<i64: 1, 8, 8, 128>}, {pipeline_mode = #tpu.pipeline_mode<synchronous>, transform_indices = @transform_1, window_bounds = array<i64: 2, 8, 128>}, {pipeline_mode = #tpu.pipeline_mode<synchronous>, transform_indices = @transform_2, window_bounds = array<i64: 2, 8, 128>}, {pipeline_mode = #tpu.pipeline_mode<synchronous>, transform_indices = @transform_3, window_bounds = array<i64: 1, 128>}, {pipeline_mode = #tpu.pipeline_mode<synchronous>, transform_indices = @transform_4, window_bounds = array<i64: 1, 128>}, {transform_indices = @transform_5, window_bounds = array<i64: 1, 8, 8, 128>}]} {
    %c0 = arith.constant 0 : index
    %c0_0 = arith.constant 0 : index
    %c0_1 = arith.constant 0 : index
    %0 = vector.load %arg2[%c0, %c0_0, %c0_1] : memref<2x8x128xf32, #tpu.memory_space<vmem>>, vector<2x8x128xf32>
    %cst = arith.constant dense<0.000000e+00> : vector<128xf32>
    %1 = vector.multi_reduction <add>, %0, %cst [0, 1] : vector<2x8x128xf32> to vector<128xf32>
    %2 = vector.shape_cast %1 : vector<128xf32> to vector<1x1x128xf32>
    %cst_2 = arith.constant 7.812500e-03 : f32
    %3 = vector.broadcast %cst_2 : f32 to vector<1x1x128xf32>
    %4 = arith.mulf %2, %3 : vector<1x1x128xf32>
    %c0_3 = arith.constant 0 : index
    %c0_4 = arith.constant 0 : index
    %c0_5 = arith.constant 0 : index
    %5 = vector.load %arg3[%c0_3, %c0_4, %c0_5] : memref<2x8x128xf32, #tpu.memory_space<vmem>>, vector<2x8x128xf32>
    %cst_6 = arith.constant dense<0.000000e+00> : vector<128xf32>
    %6 = vector.multi_reduction <add>, %5, %cst_6 [0, 1] : vector<2x8x128xf32> to vector<128xf32>
    %7 = vector.shape_cast %6 : vector<128xf32> to vector<1x1x128xf32>
    %cst_7 = arith.constant 7.812500e-03 : f32
    %8 = vector.broadcast %cst_7 : f32 to vector<1x1x128xf32>
    %9 = arith.mulf %7, %8 : vector<1x1x128xf32>
    %10 = arith.mulf %4, %4 : vector<1x1x128xf32>
    %11 = arith.subf %9, %10 : vector<1x1x128xf32>
    %cst_8 = arith.constant 0.000000e+00 : f32
    %12 = vector.broadcast %cst_8 : f32 to vector<1x1x128xf32>
    %13 = arith.maximumf %11, %12 : vector<1x1x128xf32>
    %c0_9 = arith.constant 0 : index
    %c0_10 = arith.constant 0 : index
    %14 = vector.load %arg4[%c0_9, %c0_10] : memref<1x128xf32, #tpu.memory_space<vmem>>, vector<1x128xf32>
    %15 = vector.shape_cast %14 : vector<1x128xf32> to vector<1x1x128xf32>
    %cst_11 = arith.constant 9.99999974E-6 : f32
    %16 = vector.broadcast %cst_11 : f32 to vector<1x1x128xf32>
    %17 = arith.addf %13, %16 : vector<1x1x128xf32>
    %18 = math.rsqrt %17 : vector<1x1x128xf32>
    %19 = arith.mulf %15, %18 : vector<1x1x128xf32>
    %c0_12 = arith.constant 0 : index
    %c0_13 = arith.constant 0 : index
    %20 = vector.load %arg5[%c0_12, %c0_13] : memref<1x128xf32, #tpu.memory_space<vmem>>, vector<1x128xf32>
    %21 = vector.shape_cast %20 : vector<1x128xf32> to vector<1x1x128xf32>
    %22 = arith.mulf %4, %19 : vector<1x1x128xf32>
    %23 = arith.subf %21, %22 : vector<1x1x128xf32>
    %c0_14 = arith.constant 0 : index
    %c0_15 = arith.constant 0 : index
    %c0_16 = arith.constant 0 : index
    %c0_17 = arith.constant 0 : index
    %24 = vector.load %arg1[%c0_14, %c0_15, %c0_16, %c0_17] : memref<1x8x8x128xbf16, #tpu.memory_space<vmem>>, vector<1x8x8x128xbf16>
    %25 = arith.extf %24 : vector<1x8x8x128xbf16> to vector<1x8x8x128xf32>
    %26 = vector.shape_cast %19 : vector<1x1x128xf32> to vector<1x1x1x128xf32>
    %27 = vector.broadcast %26 : vector<1x1x1x128xf32> to vector<1x8x8x128xf32>
    %28 = arith.mulf %25, %27 : vector<1x8x8x128xf32>
    %29 = vector.shape_cast %23 : vector<1x1x128xf32> to vector<1x1x1x128xf32>
    %30 = vector.broadcast %29 : vector<1x1x1x128xf32> to vector<1x8x8x128xf32>
    %31 = arith.addf %28, %30 : vector<1x8x8x128xf32>
    %cst_18 = arith.constant 0.000000e+00 : f32
    %32 = vector.broadcast %cst_18 : f32 to vector<1x8x8x128xf32>
    %33 = arith.maximumf %31, %32 : vector<1x8x8x128xf32>
    %34 = arith.truncf %33 : vector<1x8x8x128xf32> to vector<1x8x8x128xbf16>
    %c0_19 = arith.constant 0 : index
    %c0_20 = arith.constant 0 : index
    %c0_21 = arith.constant 0 : index
    %c0_22 = arith.constant 0 : index
    %35 = vector.load %arg6[%c0_19, %c0_20, %c0_21, %c0_22] : memref<1x8x8x128xbf16, #tpu.memory_space<vmem>>, vector<1x8x8x128xbf16>
    tpu.vector_store %arg6[%c0_19, %c0_20, %c0_21, %c0_22], %34 {strides = array<i32>} : memref<1x8x8x128xbf16, #tpu.memory_space<vmem>>, vector<1x8x8x128xbf16>,
    return
  }
  func.func @transform_0(%arg0: i32) -> (i32, i32, i32, i32) {
    %c0_i32 = arith.constant 0 : i32
    %c0_i32_0 = arith.constant 0 : i32
    %c0_i32_1 = arith.constant 0 : i32
    %c0_i32_2 = arith.constant 0 : i32
    return %arg0, %c0_i32, %c0_i32_0, %c0_i32_1 : i32, i32, i32, i32
  }
  func.func @transform_1(%arg0: i32) -> (i32, i32, i32) {
    %c0_i32 = arith.constant 0 : i32
    %c0_i32_0 = arith.constant 0 : i32
    %c0_i32_1 = arith.constant 0 : i32
    %c0_i32_2 = arith.constant 0 : i32
    return %c0_i32, %c0_i32_0, %c0_i32_1 : i32, i32, i32
  }
  func.func @transform_2(%arg0: i32) -> (i32, i32, i32) {
    %c0_i32 = arith.constant 0 : i32
    %c0_i32_0 = arith.constant 0 : i32
    %c0_i32_1 = arith.constant 0 : i32
    %c0_i32_2 = arith.constant 0 : i32
    return %c0_i32, %c0_i32_0, %c0_i32_1 : i32, i32, i32
  }
  func.func @transform_3(%arg0: i32) -> (i32, i32) {
    %c0_i32 = arith.constant 0 : i32
    %c0_i32_0 = arith.constant 0 : i32
    %c0_i32_1 = arith.constant 0 : i32
    return %c0_i32, %c0_i32_0 : i32, i32
  }
  func.func @transform_4(%arg0: i32) -> (i32, i32) {
    %c0_i32 = arith.constant 0 : i32
    %c0_i32_0 = arith.constant 0 : i32
    %c0_i32_1 = arith.constant 0 : i32
    return %c0_i32, %c0_i32_0 : i32, i32
  }
  func.func @transform_5(%arg0: i32) -> (i32, i32, i32, i32) {
    %c0_i32 = arith.constant 0 : i32
    %c0_i32_0 = arith.constant 0 : i32
    %c0_i32_1 = arith.constant 0 : i32
    %c0_i32_2 = arith.constant 0 : i32
    return %arg0, %c0_i32, %c0_i32_0, %c0_i32_1 : i32, i32, i32, i32
  }
}

module attributes {stable_mosaic.version = 11 : i64} {
  func.func @_bn_act_res_kernel(%arg0: i32, %arg1: memref<1x8x8x128xbf16, #tpu.memory_space<vmem>>, %arg2: memref<2x8x128xf32, #tpu.memory_space<vmem>>, %arg3: memref<2x8x128xf32, #tpu.memory_space<vmem>>, %arg4: memref<1x128xf32, #tpu.memory_space<vmem>>, %arg5: memref<1x128xf32, #tpu.memory_space<vmem>>, %arg6: memref<1x8x8x128xbf16, #tpu.memory_space<vmem>>, %arg7: memref<1x8x8x128xbf16, #tpu.memory_space<vmem>>) attributes {dimension_semantics = [#tpu.dimension_semantics<parallel>], iteration_bounds = array<i64: 2>, scalar_prefetch = 0 : i64, scratch_operands = 0 : i64, tpu.core_type = #tpu.core_type<tc>, window_params = [{transform_indices = @transform_0, window_bounds = array<i64: 1, 8, 8, 128>}, {pipeline_mode = #tpu.pipeline_mode<synchronous>, transform_indices = @transform_1, window_bounds = array<i64: 2, 8, 128>}, {pipeline_mode = #tpu.pipeline_mode<synchronous>, transform_indices = @transform_2, window_bounds = array<i64: 2, 8, 128>}, {pipeline_mode = #tpu.pipeline_mode<synchronous>, transform_indices = @transform_3, window_bounds = array<i64: 1, 128>}, {pipeline_mode = #tpu.pipeline_mode<synchronous>, transform_indices = @transform_4, window_bounds = array<i64: 1, 128>}, {transform_indices = @transform_5, window_bounds = array<i64: 1, 8, 8, 128>}, {transform_indices = @transform_6, window_bounds = array<i64: 1, 8, 8, 128>}]} {
    %c0 = arith.constant 0 : index
    %c0_0 = arith.constant 0 : index
    %c0_1 = arith.constant 0 : index
    %0 = vector.load %arg2[%c0, %c0_0, %c0_1] : memref<2x8x128xf32, #tpu.memory_space<vmem>>, vector<2x8x128xf32>
    %cst = arith.constant dense<0.000000e+00> : vector<128xf32>
    %1 = vector.multi_reduction <add>, %0, %cst [0, 1] : vector<2x8x128xf32> to vector<128xf32>
    %2 = vector.shape_cast %1 : vector<128xf32> to vector<1x1x128xf32>
    %cst_2 = arith.constant 7.812500e-03 : f32
    %3 = vector.broadcast %cst_2 : f32 to vector<1x1x128xf32>
    %4 = arith.mulf %2, %3 : vector<1x1x128xf32>
    %c0_3 = arith.constant 0 : index
    %c0_4 = arith.constant 0 : index
    %c0_5 = arith.constant 0 : index
    %5 = vector.load %arg3[%c0_3, %c0_4, %c0_5] : memref<2x8x128xf32, #tpu.memory_space<vmem>>, vector<2x8x128xf32>
    %cst_6 = arith.constant dense<0.000000e+00> : vector<128xf32>
    %6 = vector.multi_reduction <add>, %5, %cst_6 [0, 1] : vector<2x8x128xf32> to vector<128xf32>
    %7 = vector.shape_cast %6 : vector<128xf32> to vector<1x1x128xf32>
    %cst_7 = arith.constant 7.812500e-03 : f32
    %8 = vector.broadcast %cst_7 : f32 to vector<1x1x128xf32>
    %9 = arith.mulf %7, %8 : vector<1x1x128xf32>
    %10 = arith.mulf %4, %4 : vector<1x1x128xf32>
    %11 = arith.subf %9, %10 : vector<1x1x128xf32>
    %cst_8 = arith.constant 0.000000e+00 : f32
    %12 = vector.broadcast %cst_8 : f32 to vector<1x1x128xf32>
    %13 = arith.maximumf %11, %12 : vector<1x1x128xf32>
    %c0_9 = arith.constant 0 : index
    %c0_10 = arith.constant 0 : index
    %14 = vector.load %arg4[%c0_9, %c0_10] : memref<1x128xf32, #tpu.memory_space<vmem>>, vector<1x128xf32>
    %15 = vector.shape_cast %14 : vector<1x128xf32> to vector<1x1x128xf32>
    %cst_11 = arith.constant 9.99999974E-6 : f32
    %16 = vector.broadcast %cst_11 : f32 to vector<1x1x128xf32>
    %17 = arith.addf %13, %16 : vector<1x1x128xf32>
    %18 = math.rsqrt %17 : vector<1x1x128xf32>
    %19 = arith.mulf %15, %18 : vector<1x1x128xf32>
    %c0_12 = arith.constant 0 : index
    %c0_13 = arith.constant 0 : index
    %20 = vector.load %arg5[%c0_12, %c0_13] : memref<1x128xf32, #tpu.memory_space<vmem>>, vector<1x128xf32>
    %21 = vector.shape_cast %20 : vector<1x128xf32> to vector<1x1x128xf32>
    %22 = arith.mulf %4, %19 : vector<1x1x128xf32>
    %23 = arith.subf %21, %22 : vector<1x1x128xf32>
    %c0_14 = arith.constant 0 : index
    %c0_15 = arith.constant 0 : index
    %c0_16 = arith.constant 0 : index
    %c0_17 = arith.constant 0 : index
    %24 = vector.load %arg1[%c0_14, %c0_15, %c0_16, %c0_17] : memref<1x8x8x128xbf16, #tpu.memory_space<vmem>>, vector<1x8x8x128xbf16>
    %25 = arith.extf %24 : vector<1x8x8x128xbf16> to vector<1x8x8x128xf32>
    %26 = vector.shape_cast %19 : vector<1x1x128xf32> to vector<1x1x1x128xf32>
    %27 = vector.broadcast %26 : vector<1x1x1x128xf32> to vector<1x8x8x128xf32>
    %28 = arith.mulf %25, %27 : vector<1x8x8x128xf32>
    %29 = vector.shape_cast %23 : vector<1x1x128xf32> to vector<1x1x1x128xf32>
    %30 = vector.broadcast %29 : vector<1x1x1x128xf32> to vector<1x8x8x128xf32>
    %31 = arith.addf %28, %30 : vector<1x8x8x128xf32>
    %c0_18 = arith.constant 0 : index
    %c0_19 = arith.constant 0 : index
    %c0_20 = arith.constant 0 : index
    %c0_21 = arith.constant 0 : index
    %32 = vector.load %arg6[%c0_18, %c0_19, %c0_20, %c0_21] : memref<1x8x8x128xbf16, #tpu.memory_space<vmem>>, vector<1x8x8x128xbf16>
    %33 = arith.extf %32 : vector<1x8x8x128xbf16> to vector<1x8x8x128xf32>
    %34 = arith.addf %31, %33 : vector<1x8x8x128xf32>
    %cst_22 = arith.constant 0.000000e+00 : f32
    %35 = vector.broadcast %cst_22 : f32 to vector<1x8x8x128xf32>
    %36 = arith.maximumf %34, %35 : vector<1x8x8x128xf32>
    %37 = arith.truncf %36 : vector<1x8x8x128xf32> to vector<1x8x8x128xbf16>
    %c0_23 = arith.constant 0 : index
    %c0_24 = arith.constant 0 : index
    %c0_25 = arith.constant 0 : index
    %c0_26 = arith.constant 0 : index
    %38 = vector.load %arg7[%c0_23, %c0_24, %c0_25, %c0_26] : memref<1x8x8x128xbf16, #tpu.memory_space<vmem>>, vector<1x8x8x128xbf16>
    tpu.vector_store %arg7[%c0_23, %c0_24, %c0_25, %c0_26], %37 {strides = array<i32>} : memref<1x8x8x128xbf16, #tpu.memory_space<vmem>>, vector<1x8x8x128xbf16>,
    return
  }
  func.func @transform_0(%arg0: i32) -> (i32, i32, i32, i32) {
    %c0_i32 = arith.constant 0 : i32
    %c0_i32_0 = arith.constant 0 : i32
    %c0_i32_1 = arith.constant 0 : i32
    %c0_i32_2 = arith.constant 0 : i32
    return %arg0, %c0_i32, %c0_i32_0, %c0_i32_1 : i32, i32, i32, i32
  }
  func.func @transform_1(%arg0: i32) -> (i32, i32, i32) {
    %c0_i32 = arith.constant 0 : i32
    %c0_i32_0 = arith.constant 0 : i32
    %c0_i32_1 = arith.constant 0 : i32
    %c0_i32_2 = arith.constant 0 : i32
    return %c0_i32, %c0_i32_0, %c0_i32_1 : i32, i32, i32
  }
  func.func @transform_2(%arg0: i32) -> (i32, i32, i32) {
    %c0_i32 = arith.constant 0 : i32
    %c0_i32_0 = arith.constant 0 : i32
    %c0_i32_1 = arith.constant 0 : i32
    %c0_i32_2 = arith.constant 0 : i32
    return %c0_i32, %c0_i32_0, %c0_i32_1 : i32, i32, i32
  }
  func.func @transform_3(%arg0: i32) -> (i32, i32) {
    %c0_i32 = arith.constant 0 : i32
    %c0_i32_0 = arith.constant 0 : i32
    %c0_i32_1 = arith.constant 0 : i32
    return %c0_i32, %c0_i32_0 : i32, i32
  }
  func.func @transform_4(%arg0: i32) -> (i32, i32) {
    %c0_i32 = arith.constant 0 : i32
    %c0_i32_0 = arith.constant 0 : i32
    %c0_i32_1 = arith.constant 0 : i32
    return %c0_i32, %c0_i32_0 : i32, i32
  }
  func.func @transform_5(%arg0: i32) -> (i32, i32, i32, i32) {
    %c0_i32 = arith.constant 0 : i32
    %c0_i32_0 = arith.constant 0 : i32
    %c0_i32_1 = arith.constant 0 : i32
    %c0_i32_2 = arith.constant 0 : i32
    return %arg0, %c0_i32, %c0_i32_0, %c0_i32_1 : i32, i32, i32, i32
  }
  func.func @transform_6(%arg0: i32) -> (i32, i32, i32, i32) {
    %c0_i32 = arith.constant 0 : i32
    %c0_i32_0 = arith.constant 0 : i32
    %c0_i32_1 = arith.constant 0 : i32
    %c0_i32_2 = arith.constant 0 : i32
    return %arg0, %c0_i32, %c0_i32_0, %c0_i32_1 : i32, i32, i32, i32
  }
}

</mosaic_0001>

<bundles_post_ra>
// kernel: encoder_layer_forward.11
= control target key start
LH: loop header
LB: loop body
LE: loop exit
PB: predicated region body
PF: predicated region fallthrough
CT: control target
= control target key end

     0   :  { %s481_s18 = smov 0   ;;  %s523_s0 = inlined_call_operand.vmem [shape: bf16[2,8,8,128], index: 0, kind: input, shape index: {}, may-alias: {0,5}]   ;;  %s524_s1 = inlined_call_operand.vmem [shape: f32[2,8,128], index: 1, kind: input, shape index: {}]   ;;  %s525_s2 = inlined_call_operand.vmem [shape: f32[2,8,128], index: 2, kind: input, shape index: {}]   ;;  %s526_s3 = inlined_call_operand.vmem [shape: f32[1,128], index: 3, kind: input, shape index: {}]   ;;  %s527_s4 = inlined_call_operand.vmem [shape: f32[1,128], index: 4, kind: input, shape index: {}]   ;;  %s528_s5 = inlined_call_operand.vmem [shape: bf16[2,8,8,128], index: 5, kind: output, shape index: {}, may-alias: {0,5}]  }
   0x1 LB: > { %s378_s19 = sadd.s32 4294967295, %s449_s18   ;;  %p382_p0 = scmp.ge.s32.totalorder %s449_s18, 1  ;;  %s449_s18 = sphi %s481_s18, %s15_s18  }
   0x2   : > { %p187_p1 = scmp.lt.s32.totalorder %s449_s18, 3 }
   0x4   : > { %p188_p2 = pnand %p382_p0, %p187_p1 }
   0x5   : > { %v225_v0 = vld [vmem:[%s524_s1] sm:$0xff] (!%p188_p2)  ;;  %v226_v1 = vld [vmem:[%s524_s1 + $0x8] sm:$0xff] (!%p188_p2)  ;;  %p215_p3 = scmp.lt.s32.totalorder (!%p188_p2), %s378_s19, 1  ;;  %v272_v24 = vlaneseq (!%p188_p2) }
   0x6   : > { %191 = sbr.rel (%p188_p2) target bundleno = 57 (0x39), region = 40  ;;  %v235_v2 = vld [vmem:[%s525_s2] sm:$0xff] (!%p188_p2)  ;;  %v227_v3 = vadd.f32 (!%p188_p2), %v226_v1, %v225_v0  ;;  %v236_v4 = vld [vmem:[%s525_s2 + $0x8] sm:$0xff] (!%p188_p2) }
   0x7   : > { %v237_v5 = vadd.f32 (!%p188_p2), %v236_v4, %v235_v2  ;;  %v273_v25 = vshrl.u32 (!%p188_p2), %v272_v24, 7  ;;  %v248_v26 = vld [vmem:[%s526_s3] sm:$0x1] (!%p188_p2) }
   0x8   : > { %v228_v6 = vrot.slane (!%p188_p2), %v227_v3, 4  ;;  %v252_v37 = vld [vmem:[%s527_s4] sm:$0x1] (!%p188_p2) }
   0x9   : > { %v238_v7 = vrot.slane (!%p188_p2), %v237_v5, 4  ;;  %v274_v31 = vsub.s32 (!%p188_p2), 0, %v273_v25 }
   0xa   : > { %v229_v8 = vadd.f32 (!%p188_p2), %v228_v6, %v227_v3 }
   0xb   : > { %v239_v9 = vadd.f32 (!%p188_p2), %v238_v7, %v237_v5 }
   0xc   : > { %v230_v10 = vrot.slane (!%p188_p2), %v229_v8, 2 }
   0xd   : > { %v240_v11 = vrot.slane %v239_v9, 2  ;;  %s530_s19 = smov (!%p215_p3, %s378_s19), 1 }
   0xe   : > { %v231_v12 = vadd.f32 %v230_v10, %v229_v8  ;;  %s389_s28 = sshll.u32 %s530_s19, 5 }
   0xf   : > { %v241_v13 = vadd.f32 %v240_v11, %v239_v9  ;;  %s219_s6 = scalar_lea.vmem %s523_s0, %s389_s28  ;;  %s224_s13 = scalar_lea.vmem %s528_s5, %s389_s28 }
  0x10   : > { %v232_v14 = vrot.slane %v231_v12, 1  ;;  %v392_v27 = vld [vmem:[%s219_s6] sm:$0xff]   ;;  %v427_v28 = vld [vmem:[%s219_s6 + $0x8] sm:$0xff]   ;;  %v428_v29 = vld [vmem:[%s219_s6 + $0x10] sm:$0xff]  }
  0x11   : > { %v242_v15 = vrot.slane %v241_v13, 1  ;;  %v429_v30 = vld [vmem:[%s219_s6 + $0x18] sm:$0xff]   ;;  %v393_v34 = vunpack.c.l.bf16 %v392_v27  ;;  %v394_v35 = vunpack.c.h.bf16 %v392_v27  ;;  %v397_v36 = vunpack.c.l.bf16 %v427_v28 }
  0x12   : > { %v233_v16 = vadd.f32 %v232_v14, %v231_v12  ;;  %v398_v38 = vunpack.c.h.bf16 %v427_v28  ;;  %v401_v39 = vunpack.c.l.bf16 %v428_v29  ;;  %v402_v40 = vunpack.c.h.bf16 %v428_v29 }
  0x13   : > { %v243_v17 = vadd.f32 %v242_v15, %v241_v13  ;;  %v405_v41 = vunpack.c.l.bf16 %v429_v30  ;;  %v406_v43 = vunpack.c.h.bf16 %v429_v30 }
  0x14   : > { %v234_v18 = vmul.f32 0.0078125, %v233_v16 }
  0x15   : > { %v244_v19 = vmul.f32 0.0078125, %v243_v17 }
  0x16   : > { %v245_v20 = vmul.f32 %v234_v18, %v234_v18 }
  0x18   : > { %v246_v21 = vsub.f32 %v244_v19, %v245_v20 }
  0x1a   : > { %v247_v22 = vmax.f32 %v246_v21, 0.0 }
  0x1c   : > { %v249_v23 = vadd.f32 1e-05, %v247_v22 }
  0x1e   : > { %441 = vrsqrt.f32 %v249_v23 }
  0x28   : > { %v442_v32 = vpop.eup %441 }
  0x29   : > { %v251_v33 = vmul.f32 %v442_v32, %v248_v26 }
  0x2b   : > { %v253_v42 = vmul.f32 %v251_v33, %v234_v18  ;;  %v275_v44 = vrot.slane %v251_v33, %v274_v31 }
  0x2d   : > { %v254_v45 = vsub.f32 %v252_v37, %v253_v42  ;;  %v277_v46 = vmul.f32 %v393_v34, %v275_v44  ;;  %v278_v47 = vmul.f32 %v394_v35, %v275_v44  ;;  %v279_v48 = vmul.f32 %v397_v36, %v275_v44 }
  0x2e   : > { %v280_v49 = vmul.f32 %v398_v38, %v275_v44  ;;  %v281_v50 = vmul.f32 %v401_v39, %v275_v44  ;;  %v282_v51 = vmul.f32 %v402_v40, %v275_v44  ;;  %v283_v52 = vmul.f32 %v405_v41, %v275_v44 }
  0x2f   : > { %v284_v53 = vmul.f32 %v406_v43, %v275_v44  ;;  %v289_v54 = vrot.slane %v254_v45, %v274_v31 }
  0x31   : > { %v291_v55 = vadd.f32 %v289_v54, %v277_v46  ;;  %v292_v56 = vadd.f32 %v289_v54, %v278_v47  ;;  %v293_v57 = vadd.f32 %v289_v54, %v279_v48  ;;  %v294_v58 = vadd.f32 %v289_v54, %v280_v49 }
  0x32   : > { %v295_v59 = vadd.f32 %v289_v54, %v281_v50  ;;  %v296_v60 = vadd.f32 %v289_v54, %v282_v51  ;;  %v297_v61 = vadd.f32 %v289_v54, %v283_v52  ;;  %v298_v62 = vadd.f32 %v289_v54, %v284_v53 }
  0x33   : > { %v299_v63 = vmax.f32 %v291_v55, 0.0  ;;  %v300_v0 = vmax.f32 %v292_v56, 0.0  ;;  %v301_v1 = vmax.f32 %v293_v57, 0.0  ;;  %v302_v2 = vmax.f32 %v294_v58, 0.0 }
  0x34   : > { %v303_v3 = vmax.f32 %v295_v59, 0.0  ;;  %v304_v4 = vmax.f32 %v296_v60, 0.0  ;;  %v305_v5 = vmax.f32 %v297_v61, 0.0  ;;  %v306_v6 = vmax.f32 %v298_v62, 0.0 }
  0x35   : > { %v410_v7 = vpack.c.bf16 %v300_v0, %v299_v63  ;;  %v415_v8 = vpack.c.bf16 %v302_v2, %v301_v1 }
  0x36   : > { %v420_v9 = vpack.c.bf16 %v304_v4, %v303_v3  ;;  %v425_v10 = vpack.c.bf16 %v306_v6, %v305_v5 }
  0x37   : > { %411 = vst [vmem:[%s224_s13] sm:$0xff] %v410_v7   ;;  %430 = vst [vmem:[%s224_s13 + $0x8] sm:$0xff] %v415_v8  }
  0x38   : > { %431 = vst [vmem:[%s224_s13 + $0x10] sm:$0xff] %v420_v9   ;;  %432 = vst [vmem:[%s224_s13 + $0x18] sm:$0xff] %v425_v10  }
  0x39 PF: > { %s15_s18 = sadd.s32 1, %s449_s18  }
  0x3a   : > { %p12_p4 = scmp.ge.s32.totalorder %s15_s18, 4  }
  0x3c   :  { %14 = sbr.rel (!%p12_p4) target bundleno = 1 (0x1), region = 70 }

// kernel: encoder_layer_forward.9
= control target key start
LH: loop header
LB: loop body
LE: loop exit
PB: predicated region body
PF: predicated region fallthrough
CT: control target
= control target key end

     0   :  { %s610_s12 = smov 0   ;;  %s667_s0 = inlined_call_operand.vmem [shape: bf16[128,128], index: 0, kind: input, shape index: {}]   ;;  %s668_s1 = inlined_call_operand.vmem [shape: bf16[128,128], index: 1, kind: input, shape index: {}]   ;;  %s669_s2 = inlined_call_operand.vmem [shape: f32[1,128], index: 2, kind: input, shape index: {}]   ;;  %s670_s3 = inlined_call_operand.vmem [shape: bf16[128,128], index: 3, kind: output, shape index: {}]  }
   0x1 LB: > { %s447_s13 = sadd.s32 4294967295, %s588_s12   ;;  %p451_p0 = scmp.ge.s32.totalorder %s588_s12, 1  ;;  %s588_s12 = sphi %s610_s12, %s13_s12  }
   0x2   : > { %p138_p1 = scmp.lt.s32.totalorder %s588_s12, 3 }
   0x4   : > { %p139_p2 = pnand %p451_p0, %p138_p1 }
   0x5   : > { %v570_v0 = vld [vmem:[%s668_s1] sm:$0xff] (!%p139_p2)   ;;  %s452_s16 = sshll.u32 (!%p139_p2), %s447_s13, 3  ;;  %v571_v1 = vld [vmem:[%s668_s1 + $0x8] sm:$0xff] (!%p139_p2)   ;;  %v572_v2 = vld [vmem:[%s668_s1 + $0x10] sm:$0xff] (!%p139_p2)  }
   0x6   : > { %142 = sbr.rel (%p139_p2) target bundleno = 260 (0x104), region = 32  ;;  %p163_p3 = scmp.lt.s32.totalorder (!%p139_p2), %s452_s16, 15  ;;  %522 = vmatprep.subr.bf16.mxu0 (!%p139_p2), %v570_v0  ;;  %546 = vmatprep.subr.bf16.mxu1 (!%p139_p2), %v570_v0  ;;  %v573_v3 = vld [vmem:[%s668_s1 + $0x18] sm:$0xff] (!%p139_p2)   ;;  %v574_v6 = vld [vmem:[%s668_s1 + $0x20] sm:$0xff] (!%p139_p2)   ;;  %v575_v7 = vld [vmem:[%s668_s1 + $0x28] sm:$0xff] (!%p139_p2)  }
   0x7   : > { %523 = vmatpush3.bf16.msra.mxu0 (!%p139_p2), %v570_v0  ;;  %554 = vmatpush3.bf16.msra.mxu1 (!%p139_p2), %v570_v0  ;;  %v576_v8 = vld [vmem:[%s668_s1 + $0x30] sm:$0xff] (!%p139_p2)   ;;  %v577_v9 = vld [vmem:[%s668_s1 + $0x38] sm:$0xff] (!%p139_p2)   ;;  %v456_v12 = vld [vmem:[%s669_s2] ss:$0 sm:$0xff] (!%p139_p2) }
   0x8   : > { %524 = vmatprep.subr.bf16.mxu0 (!%p139_p2), %v571_v1  ;;  %547 = vmatprep.subr.bf16.mxu1 (!%p139_p2), %v571_v1 }
   0xb   : > { %525 = vmatpush3.bf16.msra.mxu0 (!%p139_p2), %v571_v1  ;;  %555 = vmatpush3.bf16.msra.mxu1 (!%p139_p2), %v571_v1 }
   0xc   : > { %526 = vmatprep.subr.bf16.mxu0 (!%p139_p2), %v572_v2  ;;  %548 = vmatprep.subr.bf16.mxu1 (!%p139_p2), %v572_v2 }
   0xd   : > { %s672_s16 = smov (!%p163_p3, %s452_s16), 15 }
   0xe   : > { %s453_s21 = sshll.u32 %s672_s16, 2 }
   0xf   : > { %s635_s24 = scalar_lea.vmem %s667_s0, %s453_s21  ;;  %527 = vmatpush3.bf16.msra.mxu0 %v572_v2  ;;  %556 = vmatpush3.bf16.msra.mxu1 %v572_v2  ;;  %s172_s13 = scalar_lea.vmem %s670_s3, %s453_s21 }
  0x10   : > { %v578_v4 = vld [vmem:[%s635_s24] sm:$0xff]   ;;  %v579_v5 = vld [vmem:[%s635_s24 + $0x10] sm:$0xff]   ;;  %528 = vmatprep.subr.bf16.mxu0 %v573_v3  ;;  %549 = vmatprep.subr.bf16.mxu1 %v573_v3  ;;  %v580_v10 = vld [vmem:[%s635_s24 + $0x8] sm:$0xff]  }
  0x11   : > { %538 = vmatprep.mubr.bf16.mxu0 %v578_v4  ;;  %542 = vmatprep.mubr.bf16.mxu1 %v579_v5  ;;  %v581_v11 = vld [vmem:[%s635_s24 + $0x18] sm:$0xff]  }
  0x13   : > { %529 = vmatpush3.bf16.msra.mxu0 %v573_v3  ;;  %557 = vmatpush3.bf16.msra.mxu1 %v573_v3 }
  0x14   : > { %530 = vmatprep.subr.bf16.mxu0 %v574_v6  ;;  %550 = vmatprep.subr.bf16.mxu1 %v574_v6 }
  0x17   : > { %531 = vmatpush3.bf16.msra.mxu0 %v574_v6  ;;  %558 = vmatpush3.bf16.msra.mxu1 %v574_v6 }
  0x18   : > { %532 = vmatprep.subr.bf16.mxu0 %v575_v7  ;;  %551 = vmatprep.subr.bf16.mxu1 %v575_v7 }
  0x1b   : > { %533 = vmatpush3.bf16.msra.mxu0 %v575_v7  ;;  %559 = vmatpush3.bf16.msra.mxu1 %v575_v7 }
  0x1c   : > { %534 = vmatprep.subr.bf16.mxu0 %v576_v8  ;;  %552 = vmatprep.subr.bf16.mxu1 %v576_v8 }
  0x1f   : > { %535 = vmatpush3.bf16.msra.mxu0 %v576_v8  ;;  %560 = vmatpush3.bf16.msra.mxu1 %v576_v8 }
  0x20   : > { %536 = vmatprep.subr.bf16.mxu0 %v577_v9  ;;  %553 = vmatprep.subr.bf16.mxu1 %v577_v9 }
  0x23   : > { %537 = vmatpush3.bf16.msra.mxu0 %v577_v9  ;;  %561 = vmatpush3.bf16.msra.mxu1 %v577_v9 }
  0x26   : > { %539 = vmatmul.mubr.bf16.vlgmr.msra.gmra.mrb[0].mxu0 %v580_v10  ;;  %543 = vmatmul.mubr.bf16.vlgmr.msra.gmra.mrb[0].mxu1 %v581_v11 }
  0xf9   : > { %v540_v13 = vpop.f32.mrb[0].mxu0  ;;  %v544_v14 = vpop.f32.mrb[0].mxu1 }
  0xfa   : > { %v321_v15 = vadd.f32 %v540_v13, %v456_v12  ;;  %v337_v16 = vadd.f32 %v544_v14, %v456_v12  ;;  %v312_v17 = vpop.f32.mrb[1].mxu0  ;;  %v328_v18 = vpop.f32.mrb[1].mxu1 }
  0xfb   : > { %v313_v19 = vadd.f32 %v456_v12, %v312_v17  ;;  %v329_v20 = vadd.f32 %v456_v12, %v328_v18  ;;  %v541_v21 = vpop.f32.mrb[2].mxu0  ;;  %v545_v22 = vpop.f32.mrb[2].mxu1 }
  0xfc   : > { %v324_v23 = vadd.f32 %v541_v21, %v456_v12  ;;  %v340_v24 = vadd.f32 %v545_v22, %v456_v12  ;;  %v315_v25 = vpop.f32.mrb[3].mxu0  ;;  %v331_v26 = vpop.f32.mrb[3].mxu1  ;;  %v345_v29 = vmax.f32 %v321_v15, 0.0  ;;  %v349_v30 = vmax.f32 %v337_v16, 0.0 }
  0xfd   : > { %v316_v27 = vadd.f32 %v456_v12, %v315_v25  ;;  %v332_v28 = vadd.f32 %v456_v12, %v331_v26  ;;  %v343_v33 = vmax.f32 %v313_v19, 0.0  ;;  %v347_v34 = vmax.f32 %v329_v20, 0.0 }
  0xfe   : > { %v346_v31 = vmax.f32 %v324_v23, 0.0  ;;  %v350_v32 = vmax.f32 %v340_v24, 0.0 }
  0xff   : > { %v344_v35 = vmax.f32 %v316_v27, 0.0  ;;  %v348_v36 = vmax.f32 %v332_v28, 0.0 }
 0x100   : > { %v495_v37 = vpack.c.bf16 %v346_v31, %v345_v29  ;;  %v505_v38 = vpack.c.bf16 %v350_v32, %v349_v30 }
 0x101   : > { %v490_v39 = vpack.c.bf16 %v344_v35, %v343_v33  ;;  %v500_v40 = vpack.c.bf16 %v348_v36, %v347_v34 }
 0x102   : > { %507 = vst [vmem:[%s172_s13 + $0x8] sm:$0xff] %v495_v37   ;;  %509 = vst [vmem:[%s172_s13 + $0x18] sm:$0xff] %v505_v38  }
 0x103   : > { %491 = vst [vmem:[%s172_s13] sm:$0xff] %v490_v39   ;;  %508 = vst [vmem:[%s172_s13 + $0x10] sm:$0xff] %v500_v40  }
 0x104 PF: > { %s13_s12 = sadd.s32 1, %s588_s12  }
 0x105   : > { %p10_p4 = scmp.ge.s32.totalorder %s13_s12, 4  }
 0x107   :  { %12 = sbr.rel (!%p10_p4) target bundleno = 1 (0x1), region = 62 }

// kernel: encoder_layer_forward.13
= control target key start
LH: loop header
LB: loop body
LE: loop exit
PB: predicated region body
PF: predicated region fallthrough
CT: control target
= control target key end

     0   :  { %s591_s21 = smov 0   ;;  %s634_s0 = inlined_call_operand.vmem [shape: bf16[2,8,8,128], index: 0, kind: input, shape index: {}, may-alias: {0,6}]   ;;  %s635_s1 = inlined_call_operand.vmem [shape: f32[2,8,128], index: 1, kind: input, shape index: {}]   ;;  %s636_s2 = inlined_call_operand.vmem [shape: f32[2,8,128], index: 2, kind: input, shape index: {}]   ;;  %s637_s3 = inlined_call_operand.vmem [shape: f32[1,128], index: 3, kind: input, shape index: {}]   ;;  %s638_s4 = inlined_call_operand.vmem [shape: f32[1,128], index: 4, kind: input, shape index: {}]   ;;  %s639_s5 = inlined_call_operand.vmem [shape: bf16[2,8,8,128], index: 5, kind: input, shape index: {}]   ;;  %s640_s6 = inlined_call_operand.vmem [shape: bf16[2,8,8,128], index: 6, kind: output, shape index: {}, may-alias: {0,6}]  }
   0x1 LB: > { %s461_s22 = sadd.s32 4294967295, %s554_s21   ;;  %p465_p0 = scmp.ge.s32.totalorder %s554_s21, 1  ;;  %s554_s21 = sphi %s591_s21, %s16_s21  }
   0x2   : > { %p222_p1 = scmp.lt.s32.totalorder %s554_s21, 3 }
   0x4   : > { %p223_p2 = pnand %p465_p0, %p222_p1 }
   0x5   : > { %v272_v0 = vld [vmem:[%s635_s1] sm:$0xff] (!%p223_p2)  ;;  %v273_v1 = vld [vmem:[%s635_s1 + $0x8] sm:$0xff] (!%p223_p2)  ;;  %p257_p3 = scmp.lt.s32.totalorder (!%p223_p2), %s461_s22, 1  ;;  %v319_v24 = vlaneseq (!%p223_p2) }
   0x6   : > { %226 = sbr.rel (%p223_p2) target bundleno = 59 (0x3b), region = 44  ;;  %v282_v2 = vld [vmem:[%s636_s2] sm:$0xff] (!%p223_p2)  ;;  %v274_v3 = vadd.f32 (!%p223_p2), %v273_v1, %v272_v0  ;;  %v283_v4 = vld [vmem:[%s636_s2 + $0x8] sm:$0xff] (!%p223_p2) }
   0x7   : > { %v284_v5 = vadd.f32 (!%p223_p2), %v283_v4, %v282_v2  ;;  %v320_v25 = vshrl.u32 (!%p223_p2), %v319_v24, 7  ;;  %v295_v26 = vld [vmem:[%s637_s3] sm:$0x1] (!%p223_p2) }
   0x8   : > { %v275_v6 = vrot.slane (!%p223_p2), %v274_v3, 4  ;;  %v299_v38 = vld [vmem:[%s638_s4] sm:$0x1] (!%p223_p2) }
   0x9   : > { %v285_v7 = vrot.slane (!%p223_p2), %v284_v5, 4  ;;  %v321_v31 = vsub.s32 (!%p223_p2), 0, %v320_v25 }
   0xa   : > { %v276_v8 = vadd.f32 (!%p223_p2), %v275_v6, %v274_v3 }
   0xb   : > { %v286_v9 = vadd.f32 (!%p223_p2), %v285_v7, %v284_v5 }
   0xc   : > { %v277_v10 = vrot.slane (!%p223_p2), %v276_v8, 2 }
   0xd   : > { %v287_v11 = vrot.slane %v286_v9, 2  ;;  %s642_s22 = smov (!%p257_p3, %s461_s22), 1 }
   0xe   : > { %v278_v12 = vadd.f32 %v277_v10, %v276_v8  ;;  %s611_s7 = sshll.u32 %s642_s22, 5 }
   0xf   : > { %v288_v13 = vadd.f32 %v287_v11, %v286_v9  ;;  %s261_s10 = scalar_lea.vmem %s634_s0, %s611_s7  ;;  %s266_s13 = scalar_lea.vmem %s639_s5, %s611_s7 }
  0x10   : > { %v279_v14 = vrot.slane %v278_v12, 1  ;;  %v478_v27 = vld [vmem:[%s261_s10] sm:$0xff]   ;;  %v529_v28 = vld [vmem:[%s261_s10 + $0x8] sm:$0xff]   ;;  %v530_v29 = vld [vmem:[%s261_s10 + $0x10] sm:$0xff]   ;;  %s271_s20 = scalar_lea.vmem %s640_s6, %s611_s7 }
  0x11   : > { %v289_v15 = vrot.slane %v288_v13, 1  ;;  %v531_v30 = vld [vmem:[%s261_s10 + $0x18] sm:$0xff]   ;;  %v479_v34 = vunpack.c.l.bf16 %v478_v27  ;;  %v480_v35 = vunpack.c.h.bf16 %v478_v27  ;;  %v483_v36 = vunpack.c.l.bf16 %v529_v28  ;;  %v494_v37 = vld [vmem:[%s266_s13] sm:$0xff]   ;;  %v532_v48 = vld [vmem:[%s266_s13 + $0x8] sm:$0xff]  }
  0x12   : > { %v280_v16 = vadd.f32 %v279_v14, %v278_v12  ;;  %v484_v39 = vunpack.c.h.bf16 %v529_v28  ;;  %v487_v40 = vunpack.c.l.bf16 %v530_v29  ;;  %v488_v41 = vunpack.c.h.bf16 %v530_v29  ;;  %v533_v53 = vld [vmem:[%s266_s13 + $0x10] sm:$0xff]   ;;  %v534_v54 = vld [vmem:[%s266_s13 + $0x18] sm:$0xff]  }
  0x13   : > { %v290_v17 = vadd.f32 %v289_v15, %v288_v13  ;;  %v491_v42 = vunpack.c.l.bf16 %v531_v30  ;;  %v492_v44 = vunpack.c.h.bf16 %v531_v30  ;;  %v495_v46 = vunpack.c.l.bf16 %v494_v37 }
  0x14   : > { %v281_v18 = vmul.f32 0.0078125, %v280_v16  ;;  %v496_v47 = vunpack.c.h.bf16 %v494_v37  ;;  %v499_v61 = vunpack.c.l.bf16 %v532_v48  ;;  %v500_v62 = vunpack.c.h.bf16 %v532_v48 }
  0x15   : > { %v291_v19 = vmul.f32 0.0078125, %v290_v17  ;;  %v503_v63 = vunpack.c.l.bf16 %v533_v53  ;;  %v504_v0 = vunpack.c.h.bf16 %v533_v53  ;;  %v507_v1 = vunpack.c.l.bf16 %v534_v54 }
  0x16   : > { %v292_v20 = vmul.f32 %v281_v18, %v281_v18  ;;  %v508_v2 = vunpack.c.h.bf16 %v534_v54 }
  0x18   : > { %v293_v21 = vsub.f32 %v291_v19, %v292_v20 }
  0x1a   : > { %v294_v22 = vmax.f32 %v293_v21, 0.0 }
  0x1c   : > { %v296_v23 = vadd.f32 1e-05, %v294_v22 }
  0x1e   : > { %546 = vrsqrt.f32 %v296_v23 }
  0x28   : > { %v547_v32 = vpop.eup %546 }
  0x29   : > { %v298_v33 = vmul.f32 %v547_v32, %v295_v26 }
  0x2b   : > { %v300_v43 = vmul.f32 %v298_v33, %v281_v18  ;;  %v322_v45 = vrot.slane %v298_v33, %v321_v31 }
  0x2d   : > { %v301_v49 = vsub.f32 %v299_v38, %v300_v43  ;;  %v324_v50 = vmul.f32 %v479_v34, %v322_v45  ;;  %v325_v51 = vmul.f32 %v480_v35, %v322_v45  ;;  %v326_v52 = vmul.f32 %v483_v36, %v322_v45 }
  0x2e   : > { %v327_v55 = vmul.f32 %v484_v39, %v322_v45  ;;  %v328_v56 = vmul.f32 %v487_v40, %v322_v45  ;;  %v329_v57 = vmul.f32 %v488_v41, %v322_v45  ;;  %v330_v58 = vmul.f32 %v491_v42, %v322_v45 }
  0x2f   : > { %v331_v59 = vmul.f32 %v492_v44, %v322_v45  ;;  %v336_v60 = vrot.slane %v301_v49, %v321_v31 }
  0x31   : > { %v338_v3 = vadd.f32 %v336_v60, %v324_v50  ;;  %v339_v4 = vadd.f32 %v336_v60, %v325_v51  ;;  %v340_v5 = vadd.f32 %v336_v60, %v326_v52  ;;  %v341_v6 = vadd.f32 %v336_v60, %v327_v55 }
  0x32   : > { %v342_v7 = vadd.f32 %v336_v60, %v328_v56  ;;  %v343_v8 = vadd.f32 %v336_v60, %v329_v57  ;;  %v344_v9 = vadd.f32 %v336_v60, %v330_v58  ;;  %v345_v10 = vadd.f32 %v336_v60, %v331_v59 }
  0x33   : > { %v362_v11 = vadd.f32 %v495_v46, %v338_v3  ;;  %v363_v12 = vadd.f32 %v496_v47, %v339_v4  ;;  %v364_v13 = vadd.f32 %v499_v61, %v340_v5  ;;  %v365_v14 = vadd.f32 %v500_v62, %v341_v6 }
  0x34   : > { %v366_v15 = vadd.f32 %v503_v63, %v342_v7  ;;  %v367_v16 = vadd.f32 %v504_v0, %v343_v8  ;;  %v368_v17 = vadd.f32 %v507_v1, %v344_v9  ;;  %v369_v18 = vadd.f32 %v508_v2, %v345_v10 }
  0x35   : > { %v370_v19 = vmax.f32 %v362_v11, 0.0  ;;  %v371_v20 = vmax.f32 %v363_v12, 0.0  ;;  %v372_v21 = vmax.f32 %v364_v13, 0.0  ;;  %v373_v22 = vmax.f32 %v365_v14, 0.0 }
  0x36   : > { %v374_v23 = vmax.f32 %v366_v15, 0.0  ;;  %v375_v24 = vmax.f32 %v367_v16, 0.0  ;;  %v376_v25 = vmax.f32 %v368_v17, 0.0  ;;  %v377_v26 = vmax.f32 %v369_v18, 0.0 }
  0x37   : > { %v512_v27 = vpack.c.bf16 %v371_v20, %v370_v19  ;;  %v517_v28 = vpack.c.bf16 %v373_v22, %v372_v21 }
  0x38   : > { %v522_v29 = vpack.c.bf16 %v375_v24, %v374_v23  ;;  %v527_v30 = vpack.c.bf16 %v377_v26, %v376_v25 }
  0x39   : > { %513 = vst [vmem:[%s271_s20] sm:$0xff] %v512_v27   ;;  %535 = vst [vmem:[%s271_s20 + $0x8] sm:$0xff] %v517_v28  }
  0x3a   : > { %536 = vst [vmem:[%s271_s20 + $0x10] sm:$0xff] %v522_v29   ;;  %537 = vst [vmem:[%s271_s20 + $0x18] sm:$0xff] %v527_v30  }
  0x3b PF: > { %s16_s21 = sadd.s32 1, %s554_s21  }
  0x3c   : > { %p13_p4 = scmp.ge.s32.totalorder %s16_s21, 4  }
  0x3e   :  { %15 = sbr.rel (!%p13_p4) target bundleno = 1 (0x1), region = 77 }

// kernel: encoder_layer_forward.10
= control target key start
LH: loop header
LB: loop body
LE: loop exit
PB: predicated region body
PF: predicated region fallthrough
CT: control target
= control target key end

     0   :  { %s3236_s15 = smov 0   ;;  %s3812_s0 = inlined_call_operand.vmem [shape: bf16[2,10,10,128], index: 0, kind: input, shape index: {}]   ;;  %s3813_s1 = inlined_call_operand.vmem [shape: bf16[9,128,128], index: 1, kind: input, shape index: {}]   ;;  %s3814_s2 = inlined_call_operand.vmem [shape: bf16[2,8,8,128], index: 2, kind: output, shape index: {0}]   ;;  %s3815_s3 = inlined_call_operand.vmem [shape: f32[2,8,128], index: 3, kind: output, shape index: {1}]   ;;  %s3816_s4 = inlined_call_operand.vmem [shape: f32[2,8,128], index: 4, kind: output, shape index: {2}]  }
   0x1 LB: > { %s2346_s16 = sadd.s32 4294967295, %s3209_s15   ;;  %p2350_p0 = scmp.ge.s32.totalorder %s3209_s15, 1  ;;  %s3209_s15 = sphi %s3236_s15, %s15_s15  }
   0x2   : > { %p167_p1 = scmp.lt.s32.totalorder %s3209_s15, 3 }
   0x4   : > { %p168_p2 = pnand %p2350_p0, %p167_p1 }
   0x5   : > { %v3119_v0 = vld [vmem:[%s3813_s1 + $0x40] sm:$0xff] (!%p168_p2)   ;;  %p201_p3 = scmp.lt.s32.totalorder (!%p168_p2), %s2346_s16, 1  ;;  %v3121_v2 = vld [vmem:[%s3813_s1 + $0x48] sm:$0xff] (!%p168_p2)   ;;  %v3123_v4 = vld [vmem:[%s3813_s1 + $0x50] sm:$0xff] (!%p168_p2)   ;;  %vm252_vm0 = vsmask.f32 (!%p168_p2), 3328 }
   0x6   : > { %171 = sbr.rel (%p168_p2) target bundleno = 406 (0x196), region = 28  ;;  %v3120_v1 = vld [vmem:[%s3813_s1 + $0x100] sm:$0xff] (!%p168_p2)   ;;  %2814 = vmatprep.subr.bf16.mxu1 (!%p168_p2), %v3119_v0  ;;  %v3122_v3 = vld [vmem:[%s3813_s1 + $0x108] sm:$0xff] (!%p168_p2)   ;;  %v3124_v5 = vld [vmem:[%s3813_s1 + $0x110] sm:$0xff] (!%p168_p2)   ;;  %vm253_vm1 = vsmask.f32 (!%p168_p2), 7440 }
   0x7   : > { %2910 = vmatprep.subr.bf16.mxu0 (!%p168_p2), %v3120_v1  ;;  %2815 = vmatpush3.bf16.msra.mxu1 (!%p168_p2), %v3119_v0  ;;  %v3125_v6 = vld [vmem:[%s3813_s1 + $0x58] sm:$0xff] (!%p168_p2)   ;;  %v3127_v8 = vld [vmem:[%s3813_s1 + $0x60] sm:$0xff] (!%p168_p2)   ;;  %v3129_v10 = vld [vmem:[%s3813_s1 + $0x68] sm:$0xff] (!%p168_p2)   ;;  %vm674_vm3 = vcmask (!%p168_p2), 1042432   ;;  %vm675_vm4 = vcmask (!%p168_p2), 1046532  }
   0x8   : > { %2911 = vmatpush3.bf16.msra.mxu0 (!%p168_p2), %v3120_v1  ;;  %2816 = vmatprep.subr.bf16.mxu1 (!%p168_p2), %v3121_v2  ;;  %v3126_v7 = vld [vmem:[%s3813_s1 + $0x118] sm:$0xff] (!%p168_p2)   ;;  %v3128_v9 = vld [vmem:[%s3813_s1 + $0x120] sm:$0xff] (!%p168_p2)   ;;  %v3130_v14 = vld [vmem:[%s3813_s1 + $0x128] sm:$0xff] (!%p168_p2)  }
   0x9   : > { %2912 = vmatprep.subr.bf16.mxu0 (!%p168_p2), %v3122_v3  ;;  %v3131_v22 = vld [vmem:[%s3813_s1 + $0x70] sm:$0xff] (!%p168_p2)   ;;  %v3133_v37 = vld [vmem:[%s3813_s1 + $0x78] sm:$0xff] (!%p168_p2)   ;;  %vm3325_vm2 = vmor (!%p168_p2), %vm252_vm0, %vm253_vm1 }
   0xa   : > { %v3132_v23 = vld [vmem:[%s3813_s1 + $0x130] sm:$0xff] (!%p168_p2)   ;;  %v3134_v47 = vld [vmem:[%s3813_s1 + $0x138] sm:$0xff] (!%p168_p2)   ;;  %v3135_v63 = vld [vmem:[%s3813_s1] sm:$0xff] (!%p168_p2)  }
   0xb   : > { %2817 = vmatpush3.bf16.msra.mxu1 (!%p168_p2), %v3121_v2  ;;  %v3357_v1 = vld [vmem:[%s3813_s1 + $0x140] sm:$0xff] (!%p168_p2)   ;;  %vm3499_vm5 = vmor (!%p168_p2), %vm674_vm3, %vm675_vm4 }
   0xc   : > { %2913 = vmatpush3.bf16.msra.mxu0 (!%p168_p2), %v3122_v3  ;;  %2818 = vmatprep.subr.bf16.mxu1 (!%p168_p2), %v3123_v4  ;;  %v3199_v38 = vld [vmem:[%s3813_s1 + $0x220] sm:$0xff] (!%p168_p2)  }
   0xd   : > { %s3822_s16 = smov (!%p201_p3, %s2346_s16), 1  ;;  %2914 = vmatprep.subr.bf16.mxu0 %v3124_v5 }
   0xe   : > { %s3110_s7 = smul.u32 80, %s3822_s16  ;;  %s2354_s29 = sshll.u32 %s3822_s16, 3 }
   0xf   : > { %2819 = vmatpush3.bf16.msra.mxu1 %v3123_v4  ;;  %s214_s6 = scalar_lea.vmem %s3815_s3, %s2354_s29  ;;  %s218_s9 = scalar_lea.vmem %s3816_s4, %s2354_s29 }
  0x10   : > { %2915 = vmatpush3.bf16.msra.mxu0 %v3124_v5  ;;  %2820 = vmatprep.subr.bf16.mxu1 %v3125_v6  ;;  %s3280_s14 = scalar_lea.vmem %s3812_s0, %s3110_s7 }
  0x11   : > { %2916 = vmatprep.subr.bf16.mxu0 %v3126_v7  ;;  %v3286_v11 = vld [vmem:[%s3280_s14] sm:$0xf]  ;;  %v3289_v12 = vld [vmem:[%s3280_s14 + $0x8] sm:$0xf]  ;;  %v3292_v13 = vld [vmem:[%s3280_s14 + $0x4] sm:$0x1] }
  0x12   : > { %v3298_v15 = vld [vmem:[%s3280_s14 + $0xc] sm:$0x1]  ;;  %v256_v16 = vshrl.u32 %v3286_v11, 16  ;;  %v259_v17 = vshll.u32 %v3286_v11, 16  ;;  %v265_v18 = vshll.u32 %v3292_v13, 16  ;;  %v270_v19 = vshrl.u32 %v3289_v12, 16 }
  0x13   : > { %2821 = vmatpush3.bf16.msra.mxu1 %v3125_v6  ;;  %v273_v20 = vshll.u32 %v3289_v12, 16  ;;  %v279_v21 = vshll.u32 %v3298_v15, 16  ;;  %v2468_v30 = vld [vmem:[%s3280_s14 + $0x8] sm:$0xf]  ;;  %v3314_v31 = vld [vmem:[%s3280_s14 + $0xc] sm:$0x1] }
  0x14   : > { %2917 = vmatpush3.bf16.msra.mxu0 %v3126_v7  ;;  %2822 = vmatprep.subr.bf16.mxu1 %v3127_v8  ;;  %v258_v24 = vrot.slane %v256_v16, 4  ;;  %v261_v25 = vrot.slane %v259_v17, 5  ;;  %v267_v26 = vrot.slane %v265_v18, 5  ;;  %v272_v27 = vrot.slane %v270_v19, 4  ;;  %v2470_v33 = vld [vmem:[%s3280_s14 + $0x10] sm:$0xf] }
  0x15   : > { %2918 = vmatprep.subr.bf16.mxu0 %v3128_v9  ;;  %v275_v28 = vrot.slane %v273_v20, 5  ;;  %v281_v29 = vrot.slane %v279_v21, 5  ;;  %v3318_v34 = vld [vmem:[%s3280_s14 + $0x14] sm:$0x1]  ;;  %v1051_v35 = vshrl.u32 %v2468_v30, 16  ;;  %v1054_v36 = vshll.u32 %v2468_v30, 16 }
  0x16   : > { %v262_v32 = vor.u32 %v261_v25, %v258_v24  ;;  %v1060_v40 = vshll.u32 %v3314_v31, 16  ;;  %v1065_v41 = vshrl.u32 %v2470_v33, 16  ;;  %v1068_v42 = vshll.u32 %v2470_v33, 16  ;;  %v3335_v51 = vld [vmem:[%s3280_s14 + $0x10] sm:$0xf] }
  0x17   : > { %2823 = vmatpush3.bf16.msra.mxu1 %v3127_v8  ;;  %v276_v39 = vor.u32 %v275_v28, %v272_v27  ;;  %v1053_v44 = vrot.slane %v1051_v35, 4  ;;  %v1056_v45 = vrot.slane %v1054_v36, 5  ;;  %v1074_v46 = vshll.u32 %v3318_v34, 16  ;;  %v3340_v55 = vld [vmem:[%s3280_s14 + $0x18] sm:$0xf] }
  0x18   : > { %2919 = vmatpush3.bf16.msra.mxu0 %v3128_v9  ;;  %2824 = vmatprep.subr.bf16.mxu1 %v3129_v10  ;;  %v263_v43 = vrot.slane %v262_v32, 4  ;;  %v1067_v49 = vrot.slane %v1065_v41, 4  ;;  %v1070_v50 = vrot.slane %v1068_v42, 5  ;;  %v1062_v54 = vrot.slane %v1060_v40, 5  ;;  %v3343_v56 = vld [vmem:[%s3280_s14 + $0x14] sm:$0x1] }
  0x19   : > { %2920 = vmatprep.subr.bf16.mxu0 %v3130_v14  ;;  %v277_v48 = vrot.slane %v276_v39, 4  ;;  %v1057_v53 = vor.u32 %v1056_v45, %v1053_v44  ;;  %v1076_v59 = vrot.slane %v1074_v46, 5  ;;  %v3348_v60 = vld [vmem:[%s3280_s14 + $0x1c] sm:$0x1]  ;;  %v284_v61 = vshrl.u32 %v3335_v51, 16 }
  0x1a   : > { %v268_v52 = vsel %vm3325_vm2, %v263_v43, %v267_v26  ;;  %v1071_v58 = vor.u32 %v1070_v50, %v1067_v49  ;;  %v287_v2 = vshll.u32 %v3335_v51, 16  ;;  %v293_v3 = vshll.u32 %v3343_v56, 16  ;;  %v2472_v8 = vld [vmem:[%s3280_s14 + $0x18] sm:$0xf]  ;;  %v3368_v16 = vld [vmem:[%s3280_s14 + $0x1c] sm:$0x1] }
  0x1b   : > { %2825 = vmatpush3.bf16.msra.mxu1 %v3129_v10  ;;  %v282_v57 = vsel %vm3325_vm2, %v277_v48, %v281_v29  ;;  %v1058_v0 = vrot.slane %v1057_v53, 4  ;;  %v286_v5 = vrot.slane %v284_v61, 4  ;;  %v298_v6 = vshrl.u32 %v3340_v55, 16  ;;  %v2474_v17 = vld [vmem:[%s3280_s14 + $0x20] sm:$0xf]  ;;  %v3137_v43 = vld [vmem:[%s3813_s1 + $0x8] sm:$0xff]  }
  0x1c   : > { %2921 = vmatpush3.bf16.msra.mxu0 %v3130_v14  ;;  %2826 = vmatprep.subr.bf16.mxu1 %v3131_v22  ;;  %v2372_v62 = vcombine.low %v268_v52, %v282_v57  ;;  %v1072_v4 = vrot.slane %v1071_v58, 4  ;;  %v301_v7 = vshll.u32 %v3340_v55, 16  ;;  %v289_v10 = vrot.slane %v287_v2, 5  ;;  %v3374_v21 = vld [vmem:[%s3280_s14 + $0x24] sm:$0x1] }
  0x1d   : > { %2922 = vmatprep.subr.bf16.mxu0 %v3132_v23  ;;  %v1063_v9 = vsel %vm3325_vm2, %v1058_v0, %v1062_v54  ;;  %v307_v14 = vshll.u32 %v3348_v60, 16  ;;  %v300_v19 = vrot.slane %v298_v6, 4  ;;  %v295_v24 = vrot.slane %v293_v3, 5  ;;  %v3138_v54 = vld [vmem:[%s3813_s1 + $0x148] sm:$0xff]   ;;  %v3404_v0 = vld [vmem:[%s3280_s14 + $0x24] sm:$0x1] }
  0x1e   : > { %2830 = vmatprep.mubr.bf16.mxu1 %v2372_v62  ;;  %v1077_v18 = vsel %vm3325_vm2, %v1072_v4, %v1076_v59  ;;  %v303_v20 = vrot.slane %v301_v7, 5  ;;  %v1079_v27 = vshrl.u32 %v2472_v8, 16  ;;  %v1082_v28 = vshll.u32 %v2472_v8, 16  ;;  %v3139_v59 = vld [vmem:[%s3813_s1 + $0x10] sm:$0xff]   ;;  %v3398_v62 = vld [vmem:[%s3280_s14 + $0x20] sm:$0xf] }
  0x1f   : > { %2827 = vmatpush3.bf16.msra.mxu1 %v3131_v22  ;;  %v2500_v22 = vcombine.low %v1063_v9, %v1077_v18  ;;  %v309_v25 = vrot.slane %v307_v14, 5  ;;  %v1088_v29 = vshll.u32 %v3368_v16, 16  ;;  %v1093_v32 = vshrl.u32 %v2474_v17, 16  ;;  %v3407_v2 = vld [vmem:[%s3280_s14 + $0x2c] sm:$0x1]  ;;  %v3140_v9 = vld [vmem:[%s3813_s1 + $0x150] sm:$0xff]  }
  0x20   : > { %2923 = vmatpush3.bf16.msra.mxu0 %v3132_v23  ;;  %2828 = vmatprep.subr.bf16.mxu1 %v3133_v37  ;;  %v290_v23 = vor.u32 %v289_v10, %v286_v5  ;;  %v304_v26 = vor.u32 %v303_v20, %v300_v19  ;;  %v1096_v33 = vshll.u32 %v2474_v17, 16  ;;  %v1102_v35 = vshll.u32 %v3374_v21, 16  ;;  %v3141_v10 = vld [vmem:[%s3813_s1 + $0x18] sm:$0xff]  }
  0x21   : > { %2924 = vmatprep.subr.bf16.mxu0 %v3134_v47  ;;  %2926 = vmatprep.mubr.bf16.mxu0 %v2500_v22  ;;  %v1084_v39 = vrot.slane %v1082_v28, 5  ;;  %v1095_v41 = vrot.slane %v1093_v32, 4  ;;  %v1090_v46 = vrot.slane %v1088_v29, 5  ;;  %v1342_v57 = vrot.slane %v3314_v31, 5  ;;  %v3142_v29 = vld [vmem:[%s3813_s1 + $0x158] sm:$0xff]  }
  0x22   : > { %v291_v30 = vrot.slane %v290_v23, 4  ;;  %v305_v36 = vrot.slane %v304_v26, 4  ;;  %v1098_v42 = vrot.slane %v1096_v33, 5  ;;  %v312_v3 = vshrl.u32 %v3398_v62, 16  ;;  %v2476_v23 = vld [vmem:[%s3280_s14 + $0x28] sm:$0xf] }
  0x23   : > { %2829 = vmatpush3.bf16.msra.mxu1 %v3133_v37  ;;  %v1081_v37 = vrot.slane %v1079_v27, 4  ;;  %v315_v4 = vshll.u32 %v3398_v62, 16  ;;  %v321_v5 = vshll.u32 %v3404_v0, 16  ;;  %v335_v8 = vshll.u32 %v3407_v2, 16  ;;  %v3428_v26 = vld [vmem:[%s3280_s14 + $0x34] sm:$0x1] }
  0x24   : > { %2925 = vmatpush3.bf16.msra.mxu0 %v3134_v47  ;;  %2838 = vmatprep.subr.bf16.mxu1 %v3135_v63  ;;  %v296_v40 = vsel %vm3325_vm2, %v291_v30, %v295_v24  ;;  %v310_v44 = vsel %vm3325_vm2, %v305_v36, %v309_v25  ;;  %v1104_v47 = vrot.slane %v1102_v35, 5  ;;  %v1099_v49 = vor.u32 %v1098_v42, %v1095_v41  ;;  %v3424_v24 = vld [vmem:[%s3280_s14 + $0x2c] sm:$0x1]  ;;  %v2478_v25 = vld [vmem:[%s3280_s14 + $0x30] sm:$0xf]  ;;  %v3143_v30 = vld [vmem:[%s3813_s1 + $0x20] sm:$0xff]  }
  0x25   : > { %2934 = vmatprep.subr.bf16.mxu0 %v3357_v1  ;;  %v1085_v45 = vor.u32 %v1084_v39, %v1081_v37  ;;  %v2373_v48 = vcombine.low %v296_v40, %v310_v44  ;;  %v314_v14 = vrot.slane %v312_v3, 4  ;;  %v317_v17 = vrot.slane %v315_v4, 5 }
  0x26   : > { %v1100_v52 = vrot.slane %v1099_v49, 4  ;;  %v323_v18 = vrot.slane %v321_v5, 5  ;;  %v337_v22 = vrot.slane %v335_v8, 5  ;;  %v1107_v27 = vshrl.u32 %v2476_v23, 16  ;;  %v2480_v5 = vld [vmem:[%s3280_s14 + $0x38] sm:$0xf] }
  0x27   : > { %v1086_v50 = vrot.slane %v1085_v45, 4  ;;  %2831 = vmatmul.mubr.bf16.vlgmr.msra.gmra.mrb[0].mxu1 %v2373_v48  ;;  %v1110_v28 = vshll.u32 %v2476_v23, 16  ;;  %v1116_v33 = vshll.u32 %v3424_v24, 16  ;;  %v1121_v35 = vshrl.u32 %v2478_v25, 16 }
  0x28   : > { %2839 = vmatpush3.bf16.msra.mxu1 %v3135_v63  ;;  %v1105_v58 = vsel %vm3325_vm2, %v1100_v52, %v1104_v47  ;;  %v3401_v63 = vld [vmem:[%s3280_s14 + $0x28] sm:$0xf]  ;;  %v1124_v36 = vshll.u32 %v2478_v25, 16  ;;  %v1109_v39 = vrot.slane %v1107_v27, 4  ;;  %v1130_v41 = vshll.u32 %v3428_v26, 16 }
  0x29   : > { %v1091_v53 = vsel %vm3325_vm2, %v1086_v50, %v1090_v46  ;;  %2840 = vmatprep.subr.bf16.mxu1 %v3137_v43  ;;  %v326_v6 = vshrl.u32 %v3401_v63, 16  ;;  %v329_v7 = vshll.u32 %v3401_v63, 16  ;;  %v1112_v40 = vrot.slane %v1110_v28, 5  ;;  %v3439_v46 = vld [vmem:[%s3280_s14 + $0x30] sm:$0xf] }
  0x2a   : > { %v2501_v61 = vcombine.low %v1091_v53, %v1105_v58  ;;  %v1123_v44 = vrot.slane %v1121_v35, 4  ;;  %v1126_v45 = vrot.slane %v1124_v36, 5  ;;  %v1132_v49 = vrot.slane %v1130_v41, 5  ;;  %v3444_v50 = vld [vmem:[%s3280_s14 + $0x38] sm:$0xf] }
  0x2b   : > { %v328_v19 = vrot.slane %v326_v6, 4  ;;  %v331_v20 = vrot.slane %v329_v7, 5  ;;  %v1113_v48 = vor.u32 %v1112_v40, %v1109_v39  ;;  %v3447_v52 = vld [vmem:[%s3280_s14 + $0x34] sm:$0x1]  ;;  %v340_v53 = vshrl.u32 %v3439_v46, 16  ;;  %v3145_v6 = vld [vmem:[%s3813_s1 + $0x28] sm:$0xff]  }
  0x2c   : > { %2927 = vmatmul.mubr.bf16.vlgmr.msra.gmra.mrb[0].mxu0 %v2501_v61  ;;  %2841 = vmatpush3.bf16.msra.mxu1 %v3137_v43  ;;  %v1118_v43 = vrot.slane %v1116_v33, 5  ;;  %v3456_v61 = vld [vmem:[%s3280_s14 + $0x3c] sm:$0x1]  ;;  %v343_v3 = vshll.u32 %v3439_v46, 16  ;;  %v349_v4 = vshll.u32 %v3447_v52, 16  ;;  %v1135_v28 = vshrl.u32 %v2480_v5, 16 }
  0x2d   : > { %2935 = vmatpush3.bf16.msra.mxu0 %v3357_v1  ;;  %2842 = vmatprep.subr.bf16.mxu1 %v3139_v59  ;;  %v318_v1 = vor.u32 %v317_v17, %v314_v14  ;;  %v332_v32 = vor.u32 %v331_v20, %v328_v19  ;;  %v1114_v8 = vrot.slane %v1113_v48, 4  ;;  %v354_v14 = vshrl.u32 %v3444_v50, 16  ;;  %v3466_v17 = vld [vmem:[%s3280_s14 + $0x3c] sm:$0x1]  ;;  %v3474_v27 = vld [vmem:[%s3280_s14 + $0x44] sm:$0x1] }
  0x2e   : > { %2936 = vmatprep.subr.bf16.mxu0 %v3138_v54  ;;  %v345_v19 = vrot.slane %v343_v3, 5  ;;  %v351_v20 = vrot.slane %v349_v4, 5  ;;  %v363_v25 = vshll.u32 %v3456_v61, 16  ;;  %v1138_v36 = vshll.u32 %v2480_v5, 16 }
  0x2f   : > { %v319_v37 = vrot.slane %v318_v1, 4  ;;  %v333_v42 = vrot.slane %v332_v32, 4  ;;  %v1119_v23 = vsel %vm3325_vm2, %v1114_v8, %v1118_v43  ;;  %v356_v1 = vrot.slane %v354_v14, 4 }
  0x30   : > { %2843 = vmatpush3.bf16.msra.mxu1 %v3139_v59  ;;  %v1127_v59 = vor.u32 %v1126_v45, %v1123_v44  ;;  %v365_v40 = vrot.slane %v363_v25, 5  ;;  %v1137_v41 = vrot.slane %v1135_v28, 4  ;;  %v1140_v45 = vrot.slane %v1138_v36, 5  ;;  %v2514_v25 = vld [vmem:[%s3280_s14 + $0x18] sm:$0xe] }
  0x31   : > { %2937 = vmatpush3.bf16.msra.mxu0 %v3138_v54  ;;  %2844 = vmatprep.subr.bf16.mxu1 %v3141_v10  ;;  %v324_v47 = vsel %vm3325_vm2, %v319_v37, %v323_v18  ;;  %v3144_v54 = vld [vmem:[%s3813_s1 + $0x160] sm:$0xff]   ;;  %v338_v58 = vsel %vm3325_vm2, %v333_v42, %v337_v22  ;;  %v357_v22 = vshll.u32 %v3444_v50, 16  ;;  %v3147_v37 = vld [vmem:[%s3813_s1 + $0x30] sm:$0xff]   ;;  %v1144_v42 = vshll.u32 %v3466_v17, 16  ;;  %v3150_v28 = vld [vmem:[%s3813_s1 + $0x178] sm:$0xff]  }
  0x32   : > { %2938 = vmatprep.subr.bf16.mxu0 %v3140_v9  ;;  %v2374_v7 = vcombine.low %v324_v47, %v338_v58  ;;  %v1128_v18 = vrot.slane %v1127_v59, 4  ;;  %v1346_v47 = vrot.slane %v3318_v34, 5  ;;  %v1350_v48 = vrot.slane %v3368_v16, 5  ;;  %v3148_v58 = vld [vmem:[%s3813_s1 + $0x170] sm:$0xff]  }
  0x33   : > { %v359_v35 = vrot.slane %v357_v22, 5  ;;  %v1141_v4 = vor.u32 %v1140_v45, %v1137_v41  ;;  %v1146_v34 = vrot.slane %v1144_v42, 5  ;;  %v1354_v22 = vrot.slane %v3374_v21, 5  ;;  %v3153_v41 = vld [vmem:[%s3813_s1 + $0x180] sm:$0xff]  }
  0x34   : > { %2845 = vmatpush3.bf16.msra.mxu1 %v3141_v10  ;;  %v342_v10 = vrot.slane %v340_v53, 4  ;;  %2834 = vmatprep.mubr.bf16.mxu1 %v2374_v7  ;;  %v1133_v32 = vsel %vm3325_vm2, %v1128_v18, %v1132_v49  ;;  %v1158_v53 = vshll.u32 %v3474_v27, 16  ;;  %v2512_v7 = vld [vmem:[%s3280_s14 + $0x8] sm:$0xe]  ;;  %v2522_v36 = vrot.slane %v2514_v25, 9 }
  0x35   : > { %2939 = vmatpush3.bf16.msra.mxu0 %v3140_v9  ;;  %2846 = vmatprep.subr.bf16.mxu1 %v3143_v30  ;;  %v2482_v9 = vld [vmem:[%s3280_s14 + $0x40] sm:$0xf]  ;;  %v2502_v39 = vcombine.low %v1119_v23, %v1133_v32  ;;  %v360_v44 = vor.u32 %v359_v35, %v356_v1  ;;  %v2520_v14 = vrot.slane %v2512_v7, 9  ;;  %v1142_v18 = vrot.slane %v1141_v4, 4 }
  0x36   : > { %2940 = vmatprep.subr.bf16.mxu0 %v3142_v29  ;;  %v346_v33 = vor.u32 %v345_v19, %v342_v10  ;;  %v1152_v49 = vshll.u32 %v2482_v9, 16  ;;  %v2513_v10 = vld [vmem:[%s3280_s14 + $0x10] sm:$0xe]  ;;  %v2384_v19 = vcombine.low %v3286_v11, %v3289_v12  ;;  %v1160_v1 = vrot.slane %v1158_v53, 5  ;;  %v2515_v12 = vld [vmem:[%s3280_s14 + $0x20] sm:$0xe] }
  0x37   : > { %2930 = vmatprep.mubr.bf16.mxu0 %v2502_v39  ;;  %v361_v3 = vrot.slane %v360_v44, 4  ;;  %v1343_v32 = vsel %vm3499_vm5, %v2520_v14, %v1342_v57  ;;  %v1147_v21 = vsel %vm3325_vm2, %v1142_v18, %v1146_v34  ;;  %v3152_v35 = vld [vmem:[%s3813_s1 + $0x80] sm:$0xff]   ;;  %v1351_v42 = vsel %vm3499_vm5, %v2522_v36, %v1350_v48  ;;  %v3157_v44 = vld [vmem:[%s3813_s1 + $0x90] sm:$0xff]  }
  0x38   : > { %2847 = vmatpush3.bf16.msra.mxu1 %v3143_v30  ;;  %v3146_v30 = vld [vmem:[%s3813_s1 + $0x168] sm:$0xff]   ;;  %v347_v43 = vrot.slane %v346_v33, 4  ;;  %v1154_v16 = vrot.slane %v1152_v49, 5  ;;  %v1358_v45 = vrot.slane %v3424_v24, 5  ;;  %v1366_v53 = vrot.slane %v3466_v17, 5  ;;  %v3161_v18 = vld [vmem:[%s3813_s1 + $0xa0] sm:$0xff]  }
  0x39   : > { %2941 = vmatpush3.bf16.msra.mxu0 %v3142_v29  ;;  %2848 = vmatprep.subr.bf16.mxu1 %v3145_v6  ;;  %v1149_v29 = vshrl.u32 %v2482_v9, 16  ;;  %v1370_v24 = vrot.slane %v3474_v27, 5  ;;  %v683_v34 = vrot.slane %v3298_v15, 5  ;;  %v687_v17 = vrot.slane %v3343_v56, 5  ;;  %v651_v15 = vld [vmem:[%s3280_s14 + $0x8] sm:$0xe] }
  0x3a   : > { %2942 = vmatprep.subr.bf16.mxu0 %v3144_v54  ;;  %v352_v59 = vsel %vm3325_vm2, %v347_v43, %v351_v20  ;;  %v2521_v20 = vrot.slane %v2513_v10, 9  ;;  %v3155_v43 = vld [vmem:[%s3813_s1 + $0x88] sm:$0xff]   ;;  %v3158_v10 = vld [vmem:[%s3813_s1 + $0x190] sm:$0xff]   ;;  %v2397_v14 = vrot.slane %v651_v15, 9  ;;  %v695_v36 = vrot.slane %v3404_v0, 5  ;;  %v3171_v0 = vld [vmem:[%s3813_s1 + $0xc0] sm:$0xff]  }
  0x3b   : > { %v1151_v5 = vrot.slane %v1149_v29, 4  ;;  %v1362_v29 = vrot.slane %v3428_v26, 5  ;;  %v2387_v26 = vcombine.low %v3439_v46, %v3444_v50  ;;  %v3159_v46 = vld [vmem:[%s3813_s1 + $0x98] sm:$0xff]   ;;  %v3176_v15 = vld [vmem:[%s3813_s1 + $0x1c8] sm:$0xff]  }
  0x3c   : > { %2849 = vmatpush3.bf16.msra.mxu1 %v3145_v6  ;;  %v3149_v6 = vld [vmem:[%s3813_s1 + $0x38] sm:$0xff]   ;;  %v1347_v11 = vsel %vm3499_vm5, %v2521_v20, %v1346_v47 }
  0x3d   : > { %2943 = vmatpush3.bf16.msra.mxu0 %v3144_v54  ;;  %2850 = vmatprep.subr.bf16.mxu1 %v3147_v37  ;;  %v366_v54 = vsel %vm3325_vm2, %v361_v3, %v365_v40  ;;  %v1155_v23 = vor.u32 %v1154_v16, %v1151_v5  ;;  %v2544_v57 = vcombine.low %v1343_v32, %v1347_v11  ;;  %v650_v16 = vld [vmem:[%s3280_s14] sm:$0xe]  ;;  %v3160_v20 = vld [vmem:[%s3813_s1 + $0x198] sm:$0xff]  }
  0x3e   : > { %2944 = vmatprep.subr.bf16.mxu0 %v3146_v30  ;;  %v2375_v9 = vcombine.low %v352_v59, %v366_v54  ;;  %v2385_v40 = vcombine.low %v3335_v51, %v3340_v55  ;;  %v2386_v51 = vcombine.low %v3398_v62, %v3401_v63  ;;  %v679_v55 = vrot.slane %v3292_v13, 5  ;;  %v3156_v62 = vld [vmem:[%s3813_s1 + $0x188] sm:$0xff]   ;;  %v2517_v63 = vld [vmem:[%s3280_s14 + $0x30] sm:$0xe]  ;;  %v2519_v59 = vld [vmem:[%s3280_s14 + $0x40] sm:$0xe] }
  0x3f   : > { %v1156_v33 = vrot.slane %v1155_v23, 4  ;;  %v2516_v13 = vld [vmem:[%s3280_s14 + $0x28] sm:$0xe]  ;;  %v2525_v49 = vrot.slane %v2517_v63, 9  ;;  %v2527_v7 = vrot.slane %v2519_v59, 9  ;;  %v2396_v56 = vrot.slane %v650_v16, 9 }
  0x40   : > { %2851 = vmatpush3.bf16.msra.mxu1 %v3147_v37  ;;  %v2523_v37 = vrot.slane %v2515_v12, 9  ;;  %v2524_v48 = vrot.slane %v2516_v13, 9  ;;  %v691_v54 = vrot.slane %v3348_v60, 5  ;;  %v652_v23 = vld [vmem:[%s3280_s14 + $0x10] sm:$0xe] }
  0x41   : > { %2945 = vmatpush3.bf16.msra.mxu0 %v3146_v30  ;;  %2835 = vmatmul.mubr.bf16.gmra.mrb[4].mxu1 %v2375_v9  ;;  %v1161_v31 = vsel %vm3325_vm2, %v1156_v33, %v1160_v1  ;;  %v1363_v4 = vsel %vm3499_vm5, %v2525_v49, %v1362_v29  ;;  %v684_v9 = vsel %vm3499_vm5, %v2397_v14, %v683_v34  ;;  %v653_v60 = vld [vmem:[%s3280_s14 + $0x18] sm:$0xe]  ;;  %v2398_v25 = vrot.slane %v652_v23, 9  ;;  %v3163_v33 = vld [vmem:[%s3813_s1 + $0xa8] sm:$0xff]  }
  0x42   : > { %2946 = vmatprep.subr.bf16.mxu0 %v3148_v58  ;;  %2852 = vmatprep.subr.bf16.mxu1 %v3149_v6  ;;  %v2503_v39 = vcombine.low %v1147_v21, %v1161_v31  ;;  %v1355_v30 = vsel %vm3499_vm5, %v2523_v37, %v1354_v22  ;;  %v1359_v3 = vsel %vm3499_vm5, %v2524_v48, %v1358_v45  ;;  %v3172_v32 = vld [vmem:[%s3280_s14 + $0x10] ss:$8 sps:$4 sm:$0xff]   ;;  %v703_v29 = vrot.slane %v3447_v52, 5  ;;  %v3175_v49 = vld [vmem:[%s3813_s1 + $0xc8] sm:$0xff]  }
  0x43   : > { %2854 = vmatprep.mubr.bf16.mxu1 %v2384_v19  ;;  %v2545_v47 = vcombine.low %v1351_v42, %v1355_v30  ;;  %v2546_v27 = vcombine.low %v1359_v3, %v1363_v4  ;;  %v680_v19 = vsel %vm3499_vm5, %v2396_v56, %v679_v55  ;;  %v688_v11 = vsel %vm3499_vm5, %v2398_v25, %v687_v17  ;;  %v3166_v31 = vld [vmem:[%s3813_s1 + $0xb0] sm:$0xff]   ;;  %v3169_v37 = vld [vmem:[%s3813_s1 + $0xb8] sm:$0xff]   ;;  %v2598_v25 = vld [vmem:[%s3280_s14 + $0x28] sm:$0xf] }
  0x44   : > { %2853 = vmatpush3.bf16.msra.mxu1 %v3149_v6  ;;  %2931 = vmatmul.mubr.bf16.gmra.mrb[4].mxu0 %v2503_v39  ;;  %v1371_v6 = vsel %vm3499_vm5, %v2527_v7, %v1370_v24  ;;  %v2420_v1 = vcombine.low %v680_v19, %v684_v9  ;;  %v654_v39 = vld [vmem:[%s3280_s14 + $0x20] sm:$0xe]  ;;  %v3170_v45 = vld [vmem:[%s3813_s1 + $0x1b8] sm:$0xff]   ;;  %v3638_v24 = vld [vmem:[%s3280_s14 + $0x14] sm:$0x1] }
  0x45   : > { %2947 = vmatpush3.bf16.msra.mxu0 %v3148_v58  ;;  %2862 = vmatprep.subr.bf16.mxu1 %v3152_v35  ;;  %v2518_v58 = vld [vmem:[%s3280_s14 + $0x38] sm:$0xe]  ;;  %v2400_v42 = vrot.slane %v654_v39, 9  ;;  %v1723_v59 = vshll.u32 %v3638_v24, 16  ;;  %v3174_v7 = vld [vmem:[%s3280_s14 + $0x20] ss:$8 sps:$4 sm:$0xff]  }
  0x46   : > { %2948 = vmatprep.subr.bf16.mxu0 %v3150_v28  ;;  %2950 = vmatprep.mubr.bf16.mxu0 %v2544_v57  ;;  %v2526_v5 = vrot.slane %v2518_v58, 9  ;;  %v3164_v57 = vld [vmem:[%s3813_s1 + $0x1a8] sm:$0xff]   ;;  %v2594_v52 = vld [vmem:[%s3280_s14 + $0x18] sm:$0xf]  ;;  %v3178_v9 = vld [vmem:[%s3813_s1 + $0x1d0] sm:$0xff]  }
  0x47   : > { %v1728_v3 = vshrl.u32 %v2594_v52, 16  ;;  %v1731_v4 = vshll.u32 %v2594_v52, 16  ;;  %v3185_v56 = vld [vmem:[%s3280_s14 + $0x30] ss:$8 sps:$4 sm:$0xff]   ;;  %v3184_v52 = vld [vmem:[%s3813_s1 + $0x1e8] sm:$0xff]  }
  0x48   : > { %v1367_v50 = vsel %vm3499_vm5, %v2526_v5, %v1366_v53  ;;  %v2592_v53 = vld [vmem:[%s3280_s14 + $0x10] sm:$0xf]  ;;  %v3179_v23 = vld [vmem:[%s3813_s1 + $0xd8] sm:$0xff]  }
  0x49   : > { %2949 = vmatpush3.bf16.msra.mxu0 %v3150_v28  ;;  %2855 = vmatmul.mubr.bf16.vlgmr.msra.gmra.mrb[0].mxu1 %v2385_v40  ;;  %v2547_v22 = vcombine.low %v1367_v50, %v1371_v6  ;;  %v2399_v28 = vrot.slane %v653_v60, 9  ;;  %v655_v40 = vld [vmem:[%s3280_s14 + $0x28] sm:$0xe]  ;;  %v1717_v58 = vshll.u32 %v2592_v53, 16  ;;  %v1730_v50 = vrot.slane %v1728_v3, 4 }
  0x4a   : > { %2958 = vmatprep.subr.bf16.mxu0 %v3153_v41  ;;  %2863 = vmatpush3.bf16.msra.mxu1 %v3152_v35  ;;  %v3162_v35 = vld [vmem:[%s3813_s1 + $0x1a0] sm:$0xff]   ;;  %v2401_v30 = vrot.slane %v655_v40, 9  ;;  %v1733_v6 = vrot.slane %v1731_v4, 5 }
  0x4b   : > { %2864 = vmatprep.subr.bf16.mxu1 %v3155_v43  ;;  %2858 = vmatprep.mubr.bf16.mxu1 %v2386_v51  ;;  %v692_v12 = vsel %vm3499_vm5, %v2399_v28, %v691_v54  ;;  %v656_v51 = vld [vmem:[%s3280_s14 + $0x30] sm:$0xe]  ;;  %v1719_v16 = vrot.slane %v1717_v58, 5  ;;  %v1725_v54 = vrot.slane %v1723_v59, 5 }
  0x4c   : > { %2951 = vmatmul.mubr.bf16.vlgmr.msra.gmra.mrb[0].mxu0 %v2545_v47  ;;  %v2421_v21 = vcombine.low %v688_v11, %v692_v12  ;;  %v707_v47 = vrot.slane %v3456_v61, 5  ;;  %v2402_v63 = vrot.slane %v656_v51, 9  ;;  %v3642_v61 = vld [vmem:[%s3280_s14 + $0x1c] sm:$0x1]  ;;  %v3187_v11 = vld [vmem:[%s3280_s14 + $0x40] ss:$8 sps:$4 sm:$0xff]  }
  0x4d   : > { %2959 = vmatpush3.bf16.msra.mxu0 %v3153_v41  ;;  %2954 = vmatprep.mubr.bf16.mxu0 %v2546_v27  ;;  %v699_v41 = vrot.slane %v3407_v2, 5  ;;  %v696_v2 = vsel %vm3499_vm5, %v2400_v42, %v695_v36  ;;  %v1737_v5 = vshll.u32 %v3642_v61, 16  ;;  %v2600_v12 = vld [vmem:[%s3280_s14 + $0x30] sm:$0xf]  ;;  %v1759_v36 = vshll.u32 %v2598_v25, 16 }
  0x4e   : > { %2865 = vmatpush3.bf16.msra.mxu1 %v3155_v43  ;;  %2960 = vmatprep.subr.bf16.mxu0 %v3156_v62  ;;  %v3167_v43 = vld [vmem:[%s3813_s1 + $0x1b0] sm:$0xff]   ;;  %v704_v34 = vsel %vm3499_vm5, %v2402_v63, %v703_v29  ;;  %v1770_v40 = vshrl.u32 %v2600_v12, 16  ;;  %v3687_v51 = vld [vmem:[%s3280_s14 + $0x24] sm:$0x1] }
  0x4f   : > { %2866 = vmatprep.subr.bf16.mxu1 %v3157_v44  ;;  %v700_v55 = vsel %vm3499_vm5, %v2401_v30, %v699_v41  ;;  %v1739_v19 = vrot.slane %v1737_v5, 5  ;;  %v1773_v41 = vshll.u32 %v2600_v12, 16  ;;  %v1761_v29 = vrot.slane %v1759_v36, 5  ;;  %v2606_v5 = vld [vmem:[%s3280_s14 + $0x48] sm:$0xf]  ;;  %v3190_v12 = vld [vmem:[%s3813_s1 + $0x1f8] sm:$0xff]  }
  0x50   : > { %v2422_v13 = vcombine.low %v696_v2, %v700_v55  ;;  %v3690_v2 = vld [vmem:[%s3280_s14 + $0x2c] sm:$0x1]  ;;  %v1751_v58 = vshll.u32 %v3687_v51, 16 }
  0x51   : > { %2859 = vmatmul.mubr.bf16.gmra.mrb[4].mxu1 %v2387_v26  ;;  %2961 = vmatpush3.bf16.msra.mxu0 %v3156_v62  ;;  %v3173_v62 = vld [vmem:[%s3813_s1 + $0x1c0] sm:$0xff]   ;;  %v1714_v26 = vshrl.u32 %v2592_v53, 16  ;;  %v1775_v63 = vrot.slane %v1773_v41, 5  ;;  %v1765_v59 = vshll.u32 %v3690_v2, 16 }
  0x52   : > { %2867 = vmatpush3.bf16.msra.mxu1 %v3157_v44  ;;  %2962 = vmatprep.subr.bf16.mxu0 %v3158_v10  ;;  %v657_v44 = vld [vmem:[%s3280_s14 + $0x38] sm:$0xe]  ;;  %v2604_v53 = vld [vmem:[%s3280_s14 + $0x40] sm:$0xf] }
  0x53   : > { %2868 = vmatprep.subr.bf16.mxu1 %v3159_v46  ;;  %2878 = vmatprep.mubr.bf16.mxu1 %v2420_v1  ;;  %v2403_v48 = vrot.slane %v657_v44, 9  ;;  %v1716_v27 = vrot.slane %v1714_v26, 4  ;;  %v2596_v1 = vld [vmem:[%s3280_s14 + $0x20] sm:$0xf]  ;;  %v3186_v26 = vld [vmem:[%s3813_s1 + $0xf0] sm:$0xff]  }
  0x54   : > { %2955 = vmatmul.mubr.bf16.gmra.mrb[4].mxu0 %v2547_v22 }
  0x55   : > { %2963 = vmatpush3.bf16.msra.mxu0 %v3158_v10  ;;  %2974 = vmatprep.mubr.bf16.mxu0 %v3172_v32  ;;  %v708_v17 = vsel %vm3499_vm5, %v2403_v48, %v707_v47  ;;  %v1720_v10 = vor.u32 %v1719_v16, %v1716_v27  ;;  %v3693_v47 = vld [vmem:[%s3280_s14 + $0x34] sm:$0x1]  ;;  %v1801_v27 = vshll.u32 %v2604_v53, 16 }
  0x56   : > { %2869 = vmatpush3.bf16.msra.mxu1 %v3159_v46  ;;  %2964 = vmatprep.subr.bf16.mxu0 %v3160_v20  ;;  %v3177_v46 = vld [vmem:[%s3813_s1 + $0xd0] sm:$0xff]   ;;  %v2423_v14 = vcombine.low %v704_v34, %v708_v17  ;;  %v1779_v3 = vshll.u32 %v3693_v47, 16  ;;  %v1798_v17 = vshrl.u32 %v2604_v53, 16  ;;  %v2637_v53 = vld [vmem:[%s3280_s14 + $0x18] sm:$0xe] }
  0x57   : > { %2870 = vmatprep.subr.bf16.mxu1 %v3161_v18  ;;  %v1721_v22 = vrot.slane %v1720_v10, 4 }
  0x59   : > { %2965 = vmatpush3.bf16.msra.mxu0 %v3160_v20  ;;  %v3191_v20 = vld [vmem:[%s3280_s14 + $0x8] ss:$8 sps:$4 sm:$0xff]   ;;  %v1726_v28 = vsel %vm3325_vm2, %v1721_v22, %v1725_v54 }
  0x5a   : > { %2871 = vmatpush3.bf16.msra.mxu1 %v3161_v18  ;;  %2966 = vmatprep.subr.bf16.mxu0 %v3162_v35  ;;  %v1734_v18 = vor.u32 %v1733_v6, %v1730_v50  ;;  %v1812_v50 = vshrl.u32 %v2606_v5, 16  ;;  %v1815_v6 = vshll.u32 %v2606_v5, 16  ;;  %v2645_v5 = vrot.slane %v2637_v53, 9 }
  0x5b   : > { %2872 = vmatprep.subr.bf16.mxu1 %v3163_v33 }
  0x5c   : > { %v1735_v60 = vrot.slane %v1734_v18, 4  ;;  %v1767_v18 = vrot.slane %v1765_v59, 5  ;;  %v3196_v59 = vld [vmem:[%s3280_s14 + $0x38] ss:$8 sps:$4 sm:$0xff]  }
  0x5d   : > { %2967 = vmatpush3.bf16.msra.mxu0 %v3162_v35  ;;  %v1742_v35 = vshrl.u32 %v2596_v1, 16 }
  0x5e   : > { %2873 = vmatpush3.bf16.msra.mxu1 %v3163_v33  ;;  %2968 = vmatprep.subr.bf16.mxu0 %v3164_v57  ;;  %v1740_v32 = vsel %vm3325_vm2, %v1735_v60, %v1739_v19  ;;  %v3181_v33 = vld [vmem:[%s3813_s1 + $0xe0] sm:$0xff]   ;;  %v3720_v60 = vld [vmem:[%s3280_s14 + $0x4c] sm:$0x1] }
  0x5f   : > { %2874 = vmatprep.subr.bf16.mxu1 %v3166_v31  ;;  %v2624_v39 = vcombine.low %v1726_v28, %v1740_v32  ;;  %v1744_v55 = vrot.slane %v1742_v35, 4  ;;  %v1814_v28 = vrot.slane %v1812_v50, 4  ;;  %v1817_v32 = vrot.slane %v1815_v6, 5  ;;  %v3192_v35 = vld [vmem:[%s3280_s14 + $0x18] ss:$8 sps:$4 sm:$0xff]   ;;  %v3200_v6 = vld [vmem:[%s3813_s1 + $0x228] sm:$0xff]  }
  0x61   : > { %2969 = vmatpush3.bf16.msra.mxu0 %v3164_v57  ;;  %v1756_v57 = vshrl.u32 %v2598_v25, 16  ;;  %v1803_v25 = vrot.slane %v1801_v27, 5 }
  0x62   : > { %2875 = vmatpush3.bf16.msra.mxu1 %v3166_v31  ;;  %2970 = vmatprep.subr.bf16.mxu0 %v3167_v43  ;;  %v1745_v31 = vshll.u32 %v2596_v1, 16  ;;  %v1800_v1 = vrot.slane %v1798_v17, 4 }
  0x63   : > { %2876 = vmatprep.subr.bf16.mxu1 %v3169_v37 }
  0x64   : > { %v1747_v44 = vrot.slane %v1745_v31, 5 }
  0x65   : > { %2971 = vmatpush3.bf16.msra.mxu0 %v3167_v43  ;;  %v3182_v43 = vld [vmem:[%s3813_s1 + $0x1e0] sm:$0xff]  }
  0x66   : > { %2877 = vmatpush3.bf16.msra.mxu1 %v3169_v37  ;;  %2972 = vmatprep.subr.bf16.mxu0 %v3170_v45  ;;  %v3180_v37 = vld [vmem:[%s3813_s1 + $0x1d8] sm:$0xff]  }
  0x67   : > { %2886 = vmatprep.subr.bf16.mxu1 %v3171_v0 }
  0x69   : > { %2879 = vmatmul.mubr.bf16.vlgmr.msra.gmra.mrb[0].mxu1 %v2421_v21  ;;  %2973 = vmatpush3.bf16.msra.mxu0 %v3170_v45  ;;  %v2602_v21 = vld [vmem:[%s3280_s14 + $0x38] sm:$0xf]  ;;  %v1758_v45 = vrot.slane %v1756_v57, 4 }
  0x6a   : > { %2887 = vmatpush3.bf16.msra.mxu1 %v3171_v0  ;;  %2882 = vmatprep.mubr.bf16.mxu1 %v2422_v13  ;;  %v1784_v42 = vshrl.u32 %v2602_v21, 16  ;;  %v1787_v30 = vshll.u32 %v2602_v21, 16  ;;  %v3183_v0 = vld [vmem:[%s3813_s1 + $0xe8] sm:$0xff]   ;;  %v1772_v13 = vrot.slane %v1770_v40, 4  ;;  %v2640_v21 = vld [vmem:[%s3280_s14 + $0x30] sm:$0xe] }
  0x6b   : > { %2888 = vmatprep.subr.bf16.mxu1 %v3175_v49  ;;  %2982 = vmatprep.subr.bf16.mxu0 %v3173_v62  ;;  %v1762_v34 = vor.u32 %v1761_v29, %v1758_v45 }
  0x6c   : > { %2975 = vmatmul.mubr.bf16.vlgmr.msra.gmra.mrb[0].mxu0 %v3174_v7  ;;  %v1786_v48 = vrot.slane %v1784_v42, 4  ;;  %v1748_v7 = vor.u32 %v1747_v44, %v1744_v55  ;;  %v1776_v16 = vor.u32 %v1775_v63, %v1772_v13  ;;  %v1804_v42 = vor.u32 %v1803_v25, %v1800_v1 }
  0x6d   : > { %2983 = vmatpush3.bf16.msra.mxu0 %v3173_v62  ;;  %2978 = vmatprep.mubr.bf16.mxu0 %v3185_v56  ;;  %v3696_v62 = vld [vmem:[%s3280_s14 + $0x3c] sm:$0x1]  ;;  %v3188_v56 = vld [vmem:[%s3813_s1 + $0x1f0] sm:$0xff]   ;;  %v1763_v54 = vrot.slane %v1762_v34, 4  ;;  %v2021_v55 = vrot.slane %v3693_v47, 5  ;;  %v2013_v25 = vrot.slane %v3687_v51, 5 }
  0x6e   : > { %2889 = vmatpush3.bf16.msra.mxu1 %v3175_v49  ;;  %2984 = vmatprep.subr.bf16.mxu0 %v3176_v15  ;;  %v1789_v49 = vrot.slane %v1787_v30, 5  ;;  %v1793_v4 = vshll.u32 %v3696_v62, 16  ;;  %v1749_v10 = vrot.slane %v1748_v7, 4  ;;  %v1777_v19 = vrot.slane %v1776_v16, 4  ;;  %v3198_v16 = vld [vmem:[%s3813_s1 + $0x218] sm:$0xff]  }
  0x6f   : > { %2890 = vmatprep.subr.bf16.mxu1 %v3177_v46  ;;  %v1768_v57 = vsel %vm3325_vm2, %v1763_v54, %v1767_v18  ;;  %v1818_v30 = vor.u32 %v1817_v32, %v1814_v28  ;;  %v2025_v45 = vrot.slane %v3696_v62, 5  ;;  %v2009_v7 = vrot.slane %v3642_v61, 5 }
  0x70   : > { %v2033_v54 = vrot.slane %v3720_v60, 5  ;;  %v2017_v32 = vrot.slane %v3690_v2, 5 }
  0x71   : > { %2883 = vmatmul.mubr.bf16.gmra.mrb[4].mxu1 %v2423_v14  ;;  %2985 = vmatpush3.bf16.msra.mxu0 %v3176_v15  ;;  %v3189_v15 = vld [vmem:[%s3813_s1 + $0xf8] sm:$0xff]   ;;  %v1753_v14 = vrot.slane %v1751_v58, 5  ;;  %v3197_v58 = vld [vmem:[%s3813_s1 + $0x210] sm:$0xff]   ;;  %v2010_v61 = vsel %vm3499_vm5, %v2645_v5, %v2009_v7 }
  0x72   : > { %2891 = vmatpush3.bf16.msra.mxu1 %v3177_v46  ;;  %2902 = vmatprep.mubr.bf16.mxu1 %v3191_v20  ;;  %v1790_v46 = vor.u32 %v1789_v49, %v1786_v48  ;;  %v1781_v20 = vrot.slane %v1779_v3, 5  ;;  %v2636_v49 = vld [vmem:[%s3280_s14 + $0x10] sm:$0xe] }
  0x73   : > { %2892 = vmatprep.subr.bf16.mxu1 %v3179_v23  ;;  %2986 = vmatprep.subr.bf16.mxu0 %v3178_v9  ;;  %v1754_v31 = vsel %vm3325_vm2, %v1749_v10, %v1753_v14  ;;  %v2644_v3 = vrot.slane %v2636_v49, 9  ;;  %v2643_v10 = vld [vmem:[%s3280_s14 + $0x48] sm:$0xe] }
  0x74   : > { %2979 = vmatmul.mubr.bf16.gmra.mrb[4].mxu0 %v3187_v11  ;;  %v1791_v22 = vrot.slane %v1790_v46, 4  ;;  %v3193_v11 = vld [vmem:[%s3813_s1 + $0x200] sm:$0xff]   ;;  %v1782_v40 = vsel %vm3325_vm2, %v1777_v19, %v1781_v20  ;;  %v2625_v29 = vcombine.low %v1754_v31, %v1768_v57  ;;  %v2651_v19 = vrot.slane %v2643_v10, 9  ;;  %v3202_v20 = vld [vmem:[%s3813_s1 + $0x238] sm:$0xff]  }
  0x75   : > { %2987 = vmatpush3.bf16.msra.mxu0 %v3178_v9  ;;  %2998 = vmatprep.mubr.bf16.mxu0 %v2624_v39  ;;  %v1795_v9 = vrot.slane %v1793_v4, 5  ;;  %v3195_v39 = vld [vmem:[%s3280_s14 + $0x28] ss:$8 sps:$4 sm:$0xff]   ;;  %v2005_v4 = vrot.slane %v3638_v24, 5 }
  0x76   : > { %2893 = vmatpush3.bf16.msra.mxu1 %v3179_v23  ;;  %2988 = vmatprep.subr.bf16.mxu0 %v3180_v37  ;;  %v3717_v23 = vld [vmem:[%s3280_s14 + $0x44] sm:$0x1] }
  0x77   : > { %2894 = vmatprep.subr.bf16.mxu1 %v3181_v33  ;;  %v1807_v36 = vshll.u32 %v3717_v23, 16  ;;  %v1796_v41 = vsel %vm3325_vm2, %v1791_v22, %v1795_v9  ;;  %v2006_v24 = vsel %vm3499_vm5, %v2644_v3, %v2005_v4  ;;  %v2029_v14 = vrot.slane %v3717_v23, 5  ;;  %v2638_v22 = vld [vmem:[%s3280_s14 + $0x20] sm:$0xe]  ;;  %v2639_v9 = vld [vmem:[%s3280_s14 + $0x28] sm:$0xe] }
  0x78   : > { %v2626_v13 = vcombine.low %v1782_v40, %v1796_v41  ;;  %v2668_v50 = vcombine.low %v2006_v24, %v2010_v61  ;;  %v2034_v23 = vsel %vm3499_vm5, %v2651_v19, %v2033_v54  ;;  %v2647_v28 = vrot.slane %v2639_v9, 9 }
  0x79   : > { %2989 = vmatpush3.bf16.msra.mxu0 %v3180_v37  ;;  %v1821_v37 = vshll.u32 %v3720_v60, 16  ;;  %v1809_v63 = vrot.slane %v1807_v36, 5  ;;  %v2646_v60 = vrot.slane %v2638_v22, 9 }
  0x7a   : > { %2895 = vmatpush3.bf16.msra.mxu1 %v3181_v33  ;;  %2990 = vmatprep.subr.bf16.mxu0 %v3182_v43  ;;  %v2641_v33 = vld [vmem:[%s3280_s14 + $0x38] sm:$0xe] }
  0x7b   : > { %2896 = vmatprep.subr.bf16.mxu1 %v3183_v0  ;;  %v2649_v44 = vrot.slane %v2641_v33, 9  ;;  %v1823_v48 = vrot.slane %v1821_v37, 5 }
  0x7d   : > { %2991 = vmatpush3.bf16.msra.mxu0 %v3182_v43  ;;  %v3194_v43 = vld [vmem:[%s3813_s1 + $0x208] sm:$0xff]   ;;  %v2026_v62 = vsel %vm3499_vm5, %v2649_v44, %v2025_v45 }
  0x7e   : > { %2897 = vmatpush3.bf16.msra.mxu1 %v3183_v0  ;;  %2992 = vmatprep.subr.bf16.mxu0 %v3184_v52  ;;  %v2648_v0 = vrot.slane %v2640_v21, 9  ;;  %v2018_v21 = vsel %vm3499_vm5, %v2647_v28, %v2017_v32 }
  0x7f   : > { %2898 = vmatprep.subr.bf16.mxu1 %v3186_v26 }
  0x80   : > { %v2022_v47 = vsel %vm3499_vm5, %v2648_v0, %v2021_v55 }
  0x81   : > { %2993 = vmatpush3.bf16.msra.mxu0 %v3184_v52  ;;  %v1805_v52 = vrot.slane %v1804_v42, 4  ;;  %v2670_v34 = vcombine.low %v2022_v47, %v2026_v62 }
  0x82   : > { %2899 = vmatpush3.bf16.msra.mxu1 %v3186_v26  ;;  %2994 = vmatprep.subr.bf16.mxu0 %v3188_v56  ;;  %v1819_v26 = vrot.slane %v1818_v30, 4 }
  0x83   : > { %2900 = vmatprep.subr.bf16.mxu1 %v3189_v15  ;;  %v1810_v17 = vsel %vm3325_vm2, %v1805_v52, %v1809_v63 }
  0x84   : > { %v1824_v27 = vsel %vm3325_vm2, %v1819_v26, %v1823_v48 }
  0x85   : > { %2995 = vmatpush3.bf16.msra.mxu0 %v3188_v56  ;;  %v2627_v46 = vcombine.low %v1810_v17, %v1824_v27  ;;  %v2642_v56 = vld [vmem:[%s3280_s14 + $0x40] sm:$0xe]  ;;  %s2682_s14 = sshll.u32 %s3822_s16, 5 }
  0x86   : > { %2901 = vmatpush3.bf16.msra.mxu1 %v3189_v15  ;;  %2996 = vmatprep.subr.bf16.mxu0 %v3190_v12  ;;  %v3201_v15 = vld [vmem:[%s3813_s1 + $0x230] sm:$0xff]   ;;  %v2650_v18 = vrot.slane %v2642_v56, 9  ;;  %s210_s28 = scalar_lea.vmem %s3814_s2, %s2682_s14 }
  0x87   : > { %3030 = vmatprep.subr.bf16.mxu1 %v3193_v11 }
  0x88   : > { %v2030_v1 = vsel %vm3499_vm5, %v2650_v18, %v2029_v14 }
  0x89   : > { %2903 = vmatmul.mubr.bf16.vlgmr.msra.gmra.mrb[0].mxu1 %v3192_v35  ;;  %2997 = vmatpush3.bf16.msra.mxu0 %v3190_v12  ;;  %v2014_v12 = vsel %vm3499_vm5, %v2646_v60, %v2013_v25 }
  0x8a   : > { %3038 = vmatpush3.bf16.msra.mxu1 %v3193_v11  ;;  %2906 = vmatprep.mubr.bf16.mxu1 %v3195_v39  ;;  %v2669_v33 = vcombine.low %v2014_v12, %v2018_v21 }
  0x8b   : > { %3031 = vmatprep.subr.bf16.mxu1 %v3194_v43  ;;  %3006 = vmatprep.subr.bf16.mxu0 %v3193_v11 }
  0x8c   : > { %2999 = vmatmul.mubr.bf16.vlgmr.msra.gmra.mrb[0].mxu0 %v2625_v29 }
  0x8d   : > { %3007 = vmatpush3.bf16.msra.mxu0 %v3193_v11  ;;  %3002 = vmatprep.mubr.bf16.mxu0 %v2626_v13  ;;  %v2671_v11 = vcombine.low %v2030_v1, %v2034_v23 }
  0x8e   : > { %3039 = vmatpush3.bf16.msra.mxu1 %v3194_v43  ;;  %3008 = vmatprep.subr.bf16.mxu0 %v3194_v43 }
  0x8f   : > { %3032 = vmatprep.subr.bf16.mxu1 %v3197_v58 }
  0x91   : > { %2907 = vmatmul.mubr.bf16.gmra.mrb[4].mxu1 %v3196_v59  ;;  %3009 = vmatpush3.bf16.msra.mxu0 %v3194_v43 }
  0x92   : > { %3040 = vmatpush3.bf16.msra.mxu1 %v3197_v58  ;;  %3026 = vmatprep.mubr.bf16.mxu1 %v2670_v34 }
  0x93   : > { %3033 = vmatprep.subr.bf16.mxu1 %v3198_v16  ;;  %3010 = vmatprep.subr.bf16.mxu0 %v3197_v58 }
  0x94   : > { %3003 = vmatmul.mubr.bf16.gmra.mrb[4].mxu0 %v2627_v46 }
  0x95   : > { %3011 = vmatpush3.bf16.msra.mxu0 %v3197_v58  ;;  %3022 = vmatprep.mubr.bf16.mxu0 %v2668_v50 }
  0x96   : > { %3041 = vmatpush3.bf16.msra.mxu1 %v3198_v16  ;;  %3012 = vmatprep.subr.bf16.mxu0 %v3198_v16 }
  0x97   : > { %3034 = vmatprep.subr.bf16.mxu1 %v3199_v38 }
  0x99   : > { %3013 = vmatpush3.bf16.msra.mxu0 %v3198_v16 }
  0x9a   : > { %3042 = vmatpush3.bf16.msra.mxu1 %v3199_v38  ;;  %3014 = vmatprep.subr.bf16.mxu0 %v3199_v38 }
  0x9b   : > { %3035 = vmatprep.subr.bf16.mxu1 %v3200_v6 }
  0x9d   : > { %3015 = vmatpush3.bf16.msra.mxu0 %v3199_v38 }
  0x9e   : > { %3043 = vmatpush3.bf16.msra.mxu1 %v3200_v6  ;;  %3016 = vmatprep.subr.bf16.mxu0 %v3200_v6 }
  0x9f   : > { %3036 = vmatprep.subr.bf16.mxu1 %v3201_v15 }
  0xa1   : > { %3017 = vmatpush3.bf16.msra.mxu0 %v3200_v6 }
  0xa2   : > { %3044 = vmatpush3.bf16.msra.mxu1 %v3201_v15  ;;  %3018 = vmatprep.subr.bf16.mxu0 %v3201_v15 }
  0xa3   : > { %3037 = vmatprep.subr.bf16.mxu1 %v3202_v20 }
  0xa5   : > { %3019 = vmatpush3.bf16.msra.mxu0 %v3201_v15 }
  0xa6   : > { %3045 = vmatpush3.bf16.msra.mxu1 %v3202_v20  ;;  %3020 = vmatprep.subr.bf16.mxu0 %v3202_v20 }
  0xa9   : > { %3027 = vmatmul.mubr.bf16.vlgmr.msra.gmra.mrb[8].mxu1 %v2671_v11  ;;  %3021 = vmatpush3.bf16.msra.mxu0 %v3202_v20 }
  0xac   : > { %3023 = vmatmul.mubr.bf16.vlgmr.msra.gmra.mrb[0].mxu0 %v2669_v33 }
 0x15c   : > { %v2904_v35 = vpop.f32.mrb[0].mxu1 }
 0x15d   : > { %v995_v51 = vpop.f32.mrb[1].mxu1 }
 0x15e   : > { %v2905_v31 = vpop.f32.mrb[2].mxu1 }
 0x15f   : > { %v998_v57 = vpop.f32.mrb[3].mxu1 }
 0x164   : > { %v2908_v2 = vpop.f32.mrb[4].mxu1 }
 0x165   : > { %v1011_v36 = vpop.f32.mrb[5].mxu1 }
 0x166   : > { %v2909_v37 = vpop.f32.mrb[6].mxu1 }
 0x167   : > { %v1014_v39 = vpop.f32.mrb[7].mxu1  ;;  %v3004_v40 = vpop.f32.mrb[4].mxu0 }
 0x168   : > { %v3050_v41 = vadd.f32 %v3004_v40, %v2908_v2  ;;  %v1956_v42 = vpop.f32.mrb[5].mxu0 }
 0x169   : > { %v3052_v30 = vadd.f32 %v1956_v42, %v1011_v36  ;;  %v3005_v8 = vpop.f32.mrb[6].mxu0 }
 0x16a   : > { %v3054_v43 = vadd.f32 %v3005_v8, %v2909_v37  ;;  %v1959_v0 = vpop.f32.mrb[7].mxu0 }
 0x16b   : > { %v3056_v55 = vadd.f32 %v1959_v0, %v1014_v39 }
 0x17c   : > { %v3028_v44 = vpop.f32.mrb[8].mxu1 }
 0x17d   : > { %v3051_v45 = vadd.f32 %v3050_v41, %v3028_v44  ;;  %v2166_v29 = vpop.f32.mrb[9].mxu1 }
 0x17e   : > { %v3053_v13 = vadd.f32 %v3052_v30, %v2166_v29  ;;  %v3029_v63 = vpop.f32.mrb[10].mxu1 }
 0x17f   : > { %v3055_v48 = vadd.f32 %v3054_v43, %v3029_v63  ;;  %v2169_v49 = vpop.f32.mrb[11].mxu1  ;;  %v3024_v52 = vpop.f32.mrb[0].mxu0  ;;  %v2219_v20 = vmul.f32 %v3051_v45, %v3051_v45 }
 0x180   : > { %v3057_v53 = vadd.f32 %v3056_v55, %v2169_v49  ;;  %v3046_v47 = vadd.f32 %v3024_v52, %v2904_v35  ;;  %v2150_v62 = vpop.f32.mrb[1].mxu0  ;;  %v2217_v56 = vmul.f32 %v3053_v13, %v3053_v13 }
 0x181   : > { %v2701_v26 = vpack.c.bf16 %v3055_v48, %v3051_v45  ;;  %v3047_v59 = vadd.f32 %v2150_v62, %v995_v51  ;;  %v3025_v3 = vpop.f32.mrb[2].mxu0  ;;  %v2220_v1 = vmul.f32 %v3055_v48, %v3055_v48 }
 0x182   : > { %v2696_v58 = vpack.c.bf16 %v3057_v53, %v3053_v13  ;;  %v3048_v4 = vadd.f32 %v3025_v3, %v2905_v31  ;;  %v2153_v5 = vpop.f32.mrb[3].mxu0  ;;  %v2215_v61 = vmul.f32 %v3046_v47, %v3046_v47  ;;  %v2218_v18 = vmul.f32 %v3057_v53, %v3057_v53 }
 0x183   : > { %2705 = vst [vmem:[%s210_s28 + $0x18] sm:$0xff] %v2701_v26   ;;  %v3049_v7 = vadd.f32 %v2153_v5, %v998_v57  ;;  %v2213_v17 = vmul.f32 %v3047_v59, %v3047_v59 }
 0x184   : > { %2704 = vst [vmem:[%s210_s28 + $0x10] sm:$0xff] %v2696_v58   ;;  %v2691_v34 = vpack.c.bf16 %v3048_v4, %v3046_v47  ;;  %v2216_v50 = vmul.f32 %v3048_v4, %v3048_v4 }
 0x185   : > { %v2686_v27 = vpack.c.bf16 %v3049_v7, %v3047_v59  ;;  %v2205_v16 = vadd.f32 %v3049_v7, %v3047_v59  ;;  %v2214_v24 = vmul.f32 %v3049_v7, %v3049_v7 }
 0x186   : > { %2703 = vst [vmem:[%s210_s28 + $0x8] sm:$0xff] %v2691_v34  }
 0x187   : > { %2687 = vst [vmem:[%s210_s28] sm:$0xff] %v2686_v27   ;;  %v2206_v46 = vadd.f32 %v3046_v47, %v2205_v16  ;;  %v2221_v38 = vadd.f32 %v2214_v24, %v2213_v17 }
 0x189   : > { %v2222_v6 = vadd.f32 %v2221_v38, %v2215_v61  ;;  %v2207_v15 = vadd.f32 %v3048_v4, %v2206_v46 }
 0x18b   : > { %v2208_v10 = vadd.f32 %v3053_v13, %v2207_v15  ;;  %v2223_v14 = vadd.f32 %v2222_v6, %v2216_v50 }
 0x18d   : > { %v2209_v54 = vadd.f32 %v3057_v53, %v2208_v10  ;;  %v2224_v19 = vadd.f32 %v2223_v14, %v2217_v56 }
 0x18f   : > { %v2210_v22 = vadd.f32 %v3051_v45, %v2209_v54  ;;  %v2225_v9 = vadd.f32 %v2224_v19, %v2218_v18 }
 0x191   : > { %v2211_v23 = vadd.f32 %v3055_v48, %v2210_v22  ;;  %v2226_v60 = vadd.f32 %v2225_v9, %v2219_v20 }
 0x193   : > { %2212 = vst [vmem:[%s214_s6] sm:$0xff] %v2211_v23  ;;  %v2227_v25 = vadd.f32 %v2226_v60, %v2220_v1 }
 0x195   : > { %2228 = vst [vmem:[%s218_s9] sm:$0xff] %v2227_v25 }
 0x196 PF: > { %s15_s15 = sadd.s32 1, %s3209_s15  }
 0x197   : > { %p12_p4 = scmp.ge.s32.totalorder %s15_s15, 4  }
 0x199   :  { %14 = sbr.rel (!%p12_p4) target bundleno = 1 (0x1), region = 92 }

</bundles_post_ra>
